<compile_context>
chip_gen: v7x
topology: tpu7x:2x2x1
jax: 0.10.0
libtpu: 0.0.40
codegen_flags: <defaults>
</compile_context>

<pallas_src>
import functools

import jax
import jax.numpy as jnp
from jax.experimental import pallas as pl
from jax.experimental.pallas import tpu as pltpu

HIDDEN = 768          # deberta-v3-base hidden size
N_STYLO = 57          # stylometric features -> 768 + 57 = 825 = out_hidden_size
NUM_LABELS = 9
N_PAD = 128           # lane-padded classifier width (sliced back to 9 in the wrapper)
K_STYLO_PAD = 128     # zero-padded stylo feature width (zeros contribute nothing)


def _round_up(x, m):
    return ((x + m - 1) // m) * m


def _deberta_stylo_kernel(hid_ref, stylo_ref, wp_ref, bp_ref,
                          wc_pool_ref, wc_stylo_ref, bc_ref, out_ref,
                          *, approx_gelu):
    """Per-batch-tile kernel: pooler dense + gelu, then split classifier matmul."""
    # CLS rows arrive f32 straight from HBM; bf16 cast here is free VPU filler under the MXU.
    cls_tok = hid_ref[...].astype(jnp.bfloat16)                          # (tile, 768)

    # ContextPooler: bf16 operands on the MXU, f32 accumulation; bias + gelu in f32.
    pooled = jnp.dot(cls_tok, wp_ref[...],
                     preferred_element_type=jnp.float32) + bp_ref[...]
    # tanh-gelu -> EUP (its own bundle slot), so the VALU is no longer the binding slot on
    # v6e/v7x.  Pass approx_gelu=False for exact-erf parity (e.g. on v5e where it hides
    # under the MXU anyway).  Pooler dropout == identity at eval.
    pooled = jax.nn.gelu(pooled, approximate=approx_gelu)

    # classifier over concat([pooled, stylo]) == pooled @ Wc_pool + stylo @ Wc_stylo (+ bc)
    logits = jnp.dot(pooled.astype(jnp.bfloat16), wc_pool_ref[...],
                     preferred_element_type=jnp.float32)
    logits = logits + jnp.dot(stylo_ref[...], wc_stylo_ref[...],
                              preferred_element_type=jnp.float32)
    # final self.model.dropout is identity at eval time
    out_ref[...] = (logits + bc_ref[...]).astype(out_ref.dtype)


def prepare_params(params):
    """One-time parameter prep: bf16 matmul weights, lane-padded classifier, f32 biases."""
    wc = params["wc"].astype(jnp.float32)                                  # (825, 9)
    wc_pool = jnp.zeros((HIDDEN, N_PAD), jnp.float32)
    wc_pool = wc_pool.at[:, :NUM_LABELS].set(wc[:HIDDEN, :])               # (768, 128)
    wc_stylo = jnp.zeros((K_STYLO_PAD, N_PAD), jnp.float32)
    wc_stylo = wc_stylo.at[:N_STYLO, :NUM_LABELS].set(wc[HIDDEN:, :])      # (128, 128)
    bc = jnp.zeros((1, N_PAD), jnp.float32)
    bc = bc.at[:, :NUM_LABELS].set(params["bc"].astype(jnp.float32))       # padding cols stay 0
    return {
        "wp": params["wp"].astype(jnp.bfloat16),                           # (768, 768)
        "bp": params["bp"].astype(jnp.float32),                            # (1, 768)
        "wc_pool": wc_pool.astype(jnp.bfloat16),
        "wc_stylo": wc_stylo.astype(jnp.bfloat16),
        "bc": bc,
    }


def _pick_tile(batch, tile_b):
    """Batch tile: big (amortize ~0.35us/step), 16-aligned, and >= 2 grid steps when possible
    so v7x's second TensorCore gets work via dimension_semantics=("parallel",)."""
    tile_b = max(16, (int(tile_b) // 16) * 16)
    if batch <= 16:
        return batch                              # one full-batch block (block dim == array dim)
    half = _round_up(-(-batch // 2), 16)          # ceil(B/2) rounded up to the sublane multiple
    return max(16, min(tile_b, half))


@functools.partial(jax.jit, static_argnames=("tile_b", "approx_gelu", "out_dtype"))
def deberta_stylo_forward(last_hidden_state, x_stylo, prepped, *,
                          tile_b=512, approx_gelu=True, out_dtype=jnp.float32):
    """Run the DebertaStylo head (ContextPooler + classifier) on TPU via Pallas."""
    B, S, H = last_hidden_state.shape
    assert H == HIDDEN and x_stylo.shape == (B, N_STYLO)

    # TODO(synk): DeBERTa-v3 encoder + HF tokenizer (create_batch) run outside the kernel;
    # `last_hidden_state` stands in for self.model.deberta(**batch_data).last_hidden_state.

    # CLS-token extraction is fused into the kernel: view (B, S, H) as (B, S*H) (free,
    # row-major) and let the BlockSpec DMA only columns [0:768] of each row, which is exactly
    # last_hidden_state[:, 0, :].  Removes the wrapper slice + cast + pad HBM passes.
    hid_flat = last_hidden_state.reshape(B, S * H)

    # Tiny K-dim zero pad of the stylo features (57 -> 128); zero columns contribute nothing.
    stylo = jnp.pad(x_stylo.astype(jnp.bfloat16),
                    ((0, 0), (0, K_STYLO_PAD - N_STYLO)))                  # (B, 128)

    tile = _pick_tile(B, tile_b)
    n_tiles = -(-B // tile)            # partial last block handled by Pallas; no batch pad copy

    def pinned(shape):
        # Constant block index -> fetched once, stays VMEM-resident across grid steps.
        return pl.BlockSpec(shape, lambda i: (0, 0))

    out = pl.pallas_call(
        functools.partial(_deberta_stylo_kernel, approx_gelu=approx_gelu),
        out_shape=jax.ShapeDtypeStruct((B, N_PAD), out_dtype),
        grid=(n_tiles,),
        in_specs=[
            pl.BlockSpec((tile, HIDDEN), lambda i: (i, 0)),                # CLS rows (f32)
            pl.BlockSpec((tile, K_STYLO_PAD), lambda i: (i, 0)),           # stylo rows (bf16)
            pinned((HIDDEN, HIDDEN)),                                      # Wp
            pinned((1, HIDDEN)),                                           # bp
            pinned((HIDDEN, N_PAD)),                                       # Wc (pooled part)
            pinned((K_STYLO_PAD, N_PAD)),                                  # Wc (stylo part)
            pinned((1, N_PAD)),                                            # bc
        ],
        out_specs=pl.BlockSpec((tile, N_PAD), lambda i: (i, 0)),
        compiler_params=pltpu.CompilerParams(
            dimension_semantics=("parallel",)),                            # megacore on v7x
    )(hid_flat, stylo, prepped["wp"], prepped["bp"],
      prepped["wc_pool"], prepped["wc_stylo"], prepped["bc"])

    return out[:, :NUM_LABELS]


def make_params(key):
    """Deterministic synthetic weights (shapes from DebertaStylo.__init__), f32 master copy."""
    k1, k2, k3, k4 = jax.random.split(key, 4)
    scale_p = 1.0 / jnp.sqrt(jnp.float32(HIDDEN))
    scale_c = 1.0 / jnp.sqrt(jnp.float32(HIDDEN + N_STYLO))
    return {
        # ContextPooler dense: hidden -> hidden
        "wp": jax.random.normal(k1, (HIDDEN, HIDDEN), jnp.float32) * scale_p,
        "bp": jax.random.normal(k2, (1, HIDDEN), jnp.float32) * 0.01,
        # classifier: Linear(in=825, out=9, bias=True)
        "wc": jax.random.normal(k3, (HIDDEN + N_STYLO, NUM_LABELS), jnp.float32) * scale_c,
        "bc": jax.random.normal(k4, (1, NUM_LABELS), jnp.float32) * 0.01,
    }


def _reference(last_hidden_state, x_stylo, params):
    """Pure-JAX reference with HF-style exact (erf) GELU."""
    cls_tok = last_hidden_state[:, 0, :].astype(jnp.float32)
    pooled = jax.nn.gelu(cls_tok @ params["wp"] + params["bp"], approximate=False)
    concat = jnp.concatenate([pooled, x_stylo.astype(jnp.float32)], axis=-1)
    return concat @ params["wc"] + params["bc"]


if __name__ == "__main__":
    key = jax.random.PRNGKey(0)
    k_h, k_s, k_p, k_h2, k_s2 = jax.random.split(key, 5)

    params = make_params(k_p)
    prepped = prepare_params(params)

    # Small single-tile case (batch=2, seq=8).
    B, S = 2, 8
    last_hidden_state = jax.random.normal(k_h, (B, S, HIDDEN), jnp.float32)
    x_stylo = jax.random.normal(k_s, (B, N_STYLO), jnp.float32)

    logits = deberta_stylo_forward(last_hidden_state, x_stylo, prepped)
    jax.block_until_ready(logits)

    ref = _reference(last_hidden_state, x_stylo, params)
    assert logits.shape == (B, NUM_LABELS)
    # bf16 operands + tanh-gelu vs exact-erf f32 reference -> relaxed tolerance.
    assert jnp.allclose(logits, ref, atol=5e-2, rtol=5e-2), "mismatch vs reference (B=2)"

    # Multi-tile case with a partial last block (exercises grid + masked-edge writeback).
    B2 = 40
    hs2 = jax.random.normal(k_h2, (B2, S, HIDDEN), jnp.float32)
    xs2 = jax.random.normal(k_s2, (B2, N_STYLO), jnp.float32)

    logits2 = deberta_stylo_forward(hs2, xs2, prepped)
    jax.block_until_ready(logits2)

    ref2 = _reference(hs2, xs2, params)
    assert logits2.shape == (B2, NUM_LABELS)
    assert jnp.allclose(logits2, ref2, atol=5e-2, rtol=5e-2), "mismatch vs reference (B=40)"

    print("KERNEL_OK")
</pallas_src>

<mosaic_0001>
module attributes {stable_mosaic.version = 11 : i64} {
  func.func @_deberta_stylo_kernel(%arg0: i32, %arg1: memref<2x768xf32, #tpu.memory_space<vmem>>, %arg2: memref<2x128xbf16, #tpu.memory_space<vmem>>, %arg3: memref<768x768xbf16, #tpu.memory_space<vmem>>, %arg4: memref<1x768xf32, #tpu.memory_space<vmem>>, %arg5: memref<768x128xbf16, #tpu.memory_space<vmem>>, %arg6: memref<128x128xbf16, #tpu.memory_space<vmem>>, %arg7: memref<1x128xf32, #tpu.memory_space<vmem>>, %arg8: memref<2x128xf32, #tpu.memory_space<vmem>>) attributes {dimension_semantics = [#tpu.dimension_semantics<parallel>], iteration_bounds = array<i64: 1>, scalar_prefetch = 0 : i64, scratch_operands = 0 : i64, tpu.core_type = #tpu.core_type<tc>, window_params = [{transform_indices = @transform_0, window_bounds = array<i64: 2, 768>}, {transform_indices = @transform_1, window_bounds = array<i64: 2, 128>}, {pipeline_mode = #tpu.pipeline_mode<synchronous>, transform_indices = @transform_2, window_bounds = array<i64: 768, 768>}, {pipeline_mode = #tpu.pipeline_mode<synchronous>, transform_indices = @transform_3, window_bounds = array<i64: 1, 768>}, {pipeline_mode = #tpu.pipeline_mode<synchronous>, transform_indices = @transform_4, window_bounds = array<i64: 768, 128>}, {pipeline_mode = #tpu.pipeline_mode<synchronous>, transform_indices = @transform_5, window_bounds = array<i64: 128, 128>}, {pipeline_mode = #tpu.pipeline_mode<synchronous>, transform_indices = @transform_6, window_bounds = array<i64: 1, 128>}, {transform_indices = @transform_7, window_bounds = array<i64: 2, 128>}]} {
    %c0 = arith.constant 0 : index
    %c0_0 = arith.constant 0 : index
    %0 = vector.load %arg1[%c0, %c0_0] : memref<2x768xf32, #tpu.memory_space<vmem>>, vector<2x768xf32>
    %1 = arith.truncf %0 : vector<2x768xf32> to vector<2x768xbf16>
    %c0_1 = arith.constant 0 : index
    %c0_2 = arith.constant 0 : index
    %2 = vector.load %arg3[%c0_1, %c0_2] : memref<768x768xbf16, #tpu.memory_space<vmem>>, vector<768x768xbf16>
    %cst = arith.constant dense<0.000000e+00> : vector<2x768xf32>
    %3 = tpu.matmul %1, %2, %cst {dimension_numbers = #tpu.dot_dimension_numbers<[1], [0], [0], [1], [0, 0, 1, 1], [], []>} : vector<2x768xbf16>, vector<768x768xbf16>, vector<2x768xf32> -> vector<2x768xf32>
    %c0_3 = arith.constant 0 : index
    %c0_4 = arith.constant 0 : index
    %4 = vector.load %arg4[%c0_3, %c0_4] : memref<1x768xf32, #tpu.memory_space<vmem>>, vector<1x768xf32>
    %5 = vector.broadcast %4 : vector<1x768xf32> to vector<2x768xf32>
    %6 = arith.addf %3, %5 : vector<2x768xf32>
    %7 = arith.mulf %6, %6 : vector<2x768xf32>
    %8 = arith.mulf %6, %7 : vector<2x768xf32>
    %cst_5 = arith.constant 4.471500e-02 : f32
    %9 = vector.broadcast %cst_5 : f32 to vector<2x768xf32>
    %10 = arith.mulf %9, %8 : vector<2x768xf32>
    %11 = arith.addf %6, %10 : vector<2x768xf32>
    %cst_6 = arith.constant 0.797884583 : f32
    %12 = vector.broadcast %cst_6 : f32 to vector<2x768xf32>
    %13 = arith.mulf %12, %11 : vector<2x768xf32>
    %14 = math.tanh %13 : vector<2x768xf32>
    %cst_7 = arith.constant 1.000000e+00 : f32
    %15 = vector.broadcast %cst_7 : f32 to vector<2x768xf32>
    %16 = arith.addf %15, %14 : vector<2x768xf32>
    %cst_8 = arith.constant 5.000000e-01 : f32
    %17 = vector.broadcast %cst_8 : f32 to vector<2x768xf32>
    %18 = arith.mulf %17, %16 : vector<2x768xf32>
    %19 = arith.mulf %6, %18 : vector<2x768xf32>
    %20 = arith.truncf %19 : vector<2x768xf32> to vector<2x768xbf16>
    %c0_9 = arith.constant 0 : index
    %c0_10 = arith.constant 0 : index
    %21 = vector.load %arg5[%c0_9, %c0_10] : memref<768x128xbf16, #tpu.memory_space<vmem>>, vector<768x128xbf16>
    %cst_11 = arith.constant dense<0.000000e+00> : vector<2x128xf32>
    %22 = tpu.matmul %20, %21, %cst_11 {dimension_numbers = #tpu.dot_dimension_numbers<[1], [0], [0], [1], [0, 0, 1, 1], [], []>} : vector<2x768xbf16>, vector<768x128xbf16>, vector<2x128xf32> -> vector<2x128xf32>
    %c0_12 = arith.constant 0 : index
    %c0_13 = arith.constant 0 : index
    %23 = vector.load %arg2[%c0_12, %c0_13] : memref<2x128xbf16, #tpu.memory_space<vmem>>, vector<2x128xbf16>
    %c0_14 = arith.constant 0 : index
    %c0_15 = arith.constant 0 : index
    %24 = vector.load %arg6[%c0_14, %c0_15] : memref<128x128xbf16, #tpu.memory_space<vmem>>, vector<128x128xbf16>
    %cst_16 = arith.constant dense<0.000000e+00> : vector<2x128xf32>
    %25 = tpu.matmul %23, %24, %cst_16 {dimension_numbers = #tpu.dot_dimension_numbers<[1], [0], [0], [1], [0, 0, 1, 1], [], []>} : vector<2x128xbf16>, vector<128x128xbf16>, vector<2x128xf32> -> vector<2x128xf32>
    %26 = arith.addf %22, %25 : vector<2x128xf32>
    %c0_17 = arith.constant 0 : index
    %c0_18 = arith.constant 0 : index
    %27 = vector.load %arg7[%c0_17, %c0_18] : memref<1x128xf32, #tpu.memory_space<vmem>>, vector<1x128xf32>
    %28 = vector.broadcast %27 : vector<1x128xf32> to vector<2x128xf32>
    %29 = arith.addf %26, %28 : vector<2x128xf32>
    %c0_19 = arith.constant 0 : index
    %c0_20 = arith.constant 0 : index
    %30 = vector.load %arg8[%c0_19, %c0_20] : memref<2x128xf32, #tpu.memory_space<vmem>>, vector<2x128xf32>
    tpu.vector_store %arg8[%c0_19, %c0_20], %29 {strides = array<i32>} : memref<2x128xf32, #tpu.memory_space<vmem>>, vector<2x128xf32>,
    return
  }
  func.func @transform_0(%arg0: i32) -> (i32, i32) {
    %c0_i32 = arith.constant 0 : i32
    %c0_i32_0 = arith.constant 0 : i32
    return %arg0, %c0_i32 : i32, i32
  }
  func.func @transform_1(%arg0: i32) -> (i32, i32) {
    %c0_i32 = arith.constant 0 : i32
    %c0_i32_0 = arith.constant 0 : i32
    return %arg0, %c0_i32 : i32, i32
  }
  func.func @transform_2(%arg0: i32) -> (i32, i32) {
    %c0_i32 = arith.constant 0 : i32
    %c0_i32_0 = arith.constant 0 : i32
    %c0_i32_1 = arith.constant 0 : i32
    return %c0_i32, %c0_i32_0 : i32, i32
  }
  func.func @transform_3(%arg0: i32) -> (i32, i32) {
    %c0_i32 = arith.constant 0 : i32
    %c0_i32_0 = arith.constant 0 : i32
    %c0_i32_1 = arith.constant 0 : i32
    return %c0_i32, %c0_i32_0 : i32, i32
  }
  func.func @transform_4(%arg0: i32) -> (i32, i32) {
    %c0_i32 = arith.constant 0 : i32
    %c0_i32_0 = arith.constant 0 : i32
    %c0_i32_1 = arith.constant 0 : i32
    return %c0_i32, %c0_i32_0 : i32, i32
  }
  func.func @transform_5(%arg0: i32) -> (i32, i32) {
    %c0_i32 = arith.constant 0 : i32
    %c0_i32_0 = arith.constant 0 : i32
    %c0_i32_1 = arith.constant 0 : i32
    return %c0_i32, %c0_i32_0 : i32, i32
  }
  func.func @transform_6(%arg0: i32) -> (i32, i32) {
    %c0_i32 = arith.constant 0 : i32
    %c0_i32_0 = arith.constant 0 : i32
    %c0_i32_1 = arith.constant 0 : i32
    return %c0_i32, %c0_i32_0 : i32, i32
  }
  func.func @transform_7(%arg0: i32) -> (i32, i32) {
    %c0_i32 = arith.constant 0 : i32
    %c0_i32_0 = arith.constant 0 : i32
    return %arg0, %c0_i32 : i32, i32
  }
}

</mosaic_0001>

<bundles_post_ra>
// kernel: deberta_stylo_forward.1
= control target key start
LH: loop header
LB: loop body
LE: loop exit
PB: predicated region body
PF: predicated region fallthrough
CT: control target
= control target key end

     0   :  { %12 = vsyncpa [#allocation3], 0  ;;  %s4281_s0 = inlined_call_operand.vmem [shape: f32[2,6144], index: 0, kind: input, shape index: {}]   ;;  %s4282_s1 = inlined_call_operand.vmem [shape: bf16[2,128], index: 1, kind: input, shape index: {}]   ;;  %s4283_s2 = inlined_call_operand.hbm [shape: bf16[768,768], index: 2, kind: input, shape index: {}]   ;;  %s4284_s3 = inlined_call_operand.hbm [shape: f32[1,768], index: 3, kind: input, shape index: {}]   ;;  %s4285_s4 = inlined_call_operand.hbm [shape: bf16[768,128], index: 4, kind: input, shape index: {}]   ;;  %s4286_s5 = inlined_call_operand.hbm [shape: bf16[128,128], index: 5, kind: input, shape index: {}]   ;;  %s4287_s6 = inlined_call_operand.hbm [shape: f32[1,128], index: 6, kind: input, shape index: {}]   ;;  %s4288_s7 = inlined_call_operand.hbm [shape: f32[2,128], index: 7, kind: output, shape index: {}]  }
   0x1   :  { %13 = vsyncpa [#allocation6], 0 }
   0x2   :  { %14 = vsyncpa [#allocation9], 0 }
   0x3   :  { %15 = vsyncpa [#allocation4], 0  ;;  %s4082_s24 = smov [#allocation5]   ;;  %s3942_s28 = scalar_lea.hbm %s4284_s3, 96 }
   0x4   :  { %s38_s25 = sshll.u32 %s4082_s24, 4  ;;  %p3943_p0 = scmp.ne.s32.totalorder %s4284_s3, %s3942_s28  ;;  %s39_s25 = int_to_ptr.vmem [resolvable:$true] %s38_s25 }
   0x5   :  { %p3946_p1 = scmp.lt.u32.totalorder %s3942_s28, %s4284_s3 }
   0x7   :  { %p3948_p2 = pnand %p3946_p1, %p3943_p0 }
   0x9   :  { %3951 = shalt.err (!%p3948_p2)
}
   0xa   :  { %s3952_s10 = scalar_lea.vmem %s39_s25, 96  ;;  %p3957_p4 = scmp.lt.s32.totalorder %s39_s25, %s39_s25 }
   0xb   :  { %p3953_p3 = scmp.ne.s32.totalorder %s39_s25, %s3952_s10  ;;  %p3958_p5 = scmp.lt.s32.totalorder %s3952_s10, %s3952_s10 }
   0xd   :  { %p3959_p6 = por %p3958_p5, %p3957_p4 }
   0xf   :  { %p3960_p7 = pnand %p3959_p6, %p3953_p3 }
  0x11   :  { %3963 = shalt.err (!%p3960_p7)
}
  0x12   :  { %41 = dma.hbm_to_vmem [thread:$0]  %s4284_s3, 96, %s39_s25, [#allocation6]  }
  0x13   :  { %s4083_s13 = smov [#allocation8]   ;;  %s4084_s15 = smov [#allocation2]  }
  0x14   :  { %s59_s14 = sshll.u32 %s4083_s13, 4  ;;  %s25_s16 = sshll.u32 %s4084_s15, 4  ;;  %s60_s14 = int_to_ptr.vmem [resolvable:$true] %s59_s14  ;;  %s26_s16 = int_to_ptr.vmem [resolvable:$true] %s25_s16 }
  0x15   :  { %s3964_s19 = scalar_lea.hbm %s4286_s5, 1024 }
  0x16   :  { %p3965_p8 = scmp.ne.s32.totalorder %s4286_s5, %s3964_s19  ;;  %p3968_p9 = scmp.lt.u32.totalorder %s3964_s19, %s4286_s5 }
  0x18   :  { %p3970_p10 = pnand %p3968_p9, %p3965_p8 }
  0x1a   :  { %3973 = shalt.err (!%p3970_p10)
}
  0x1b   :  { %s3974_s3 = scalar_lea.vmem %s60_s14, 1024  ;;  %p3979_p12 = scmp.lt.s32.totalorder %s60_s14, %s60_s14 }
  0x1c   :  { %p3975_p11 = scmp.ne.s32.totalorder %s60_s14, %s3974_s3  ;;  %p3980_p13 = scmp.lt.s32.totalorder %s3974_s3, %s3974_s3 }
  0x1e   :  { %p3981_p0 = por %p3980_p13, %p3979_p12 }
  0x20   :  { %p3982_p1 = pnand %p3981_p0, %p3975_p11 }
  0x22   :  { %3985 = shalt.err (!%p3982_p1)
}
  0x23   :  { %s4085_s24 = smov 64   ;;  %s4086_s25 = smov 4  }
  0x24   :  { %65 = dma.hbm_to_vmem [thread:$0]  %s4286_s5, 1024, %s60_s14, [#allocation9], %s4085_s24, %s4085_s24, %s4086_s25  }
  0x25   :  { %s3986_s30 = scalar_lea.hbm %s4283_s2, 36864 }
  0x26   :  { %p3987_p2 = scmp.ne.s32.totalorder %s4283_s2, %s3986_s30  ;;  %p3990_p3 = scmp.lt.u32.totalorder %s3986_s30, %s4283_s2 }
  0x28   :  { %p3992_p4 = pnand %p3990_p3, %p3987_p2 }
  0x2a   :  { %3995 = shalt.err (!%p3992_p4)
}
  0x2b   :  { %s3996_s12 = scalar_lea.vmem %s26_s16, 36864  ;;  %p4001_p6 = scmp.lt.s32.totalorder %s26_s16, %s26_s16 }
  0x2c   :  { %p3997_p5 = scmp.ne.s32.totalorder %s26_s16, %s3996_s12  ;;  %p4002_p7 = scmp.lt.s32.totalorder %s3996_s12, %s3996_s12 }
  0x2e   :  { %p4003_p8 = por %p4002_p7, %p4001_p6 }
  0x30   :  { %p4004_p9 = pnand %p4003_p8, %p3997_p5 }
  0x32   :  { %4007 = shalt.err (!%p4004_p9)
}
  0x33   :  { %s4087_s5 = smov 384   ;;  %s4088_s13 = smov 24  }
  0x34   :  { %31 = dma.hbm_to_vmem [thread:$0]  %s4283_s2, 36864, %s26_s16, [#allocation3], %s4087_s5, %s4087_s5, %s4088_s13  }
  0x35   :  { %s4089_s17 = smov [#allocation7]   ;;  %s4090_s19 = smov [#allocation10]  }
  0x36   :  { %s47_s18 = sshll.u32 %s4089_s17, 4  ;;  %s72_s20 = sshll.u32 %s4090_s19, 4  ;;  %s48_s18 = int_to_ptr.vmem [resolvable:$true] %s47_s18  ;;  %s73_s20 = int_to_ptr.vmem [resolvable:$true] %s72_s20 }
  0x37   :  { %s4008_s23 = scalar_lea.hbm %s4285_s4, 6144 }
  0x38   :  { %p4009_p10 = scmp.ne.s32.totalorder %s4285_s4, %s4008_s23  ;;  %p4012_p11 = scmp.lt.u32.totalorder %s4008_s23, %s4285_s4 }
  0x3a   :  { %p4014_p12 = pnand %p4012_p11, %p4009_p10 }
  0x3c   :  { %4017 = shalt.err (!%p4014_p12)
}
  0x3d   :  { %s4018_s2 = scalar_lea.vmem %s48_s18, 6144  ;;  %p4023_p0 = scmp.lt.s32.totalorder %s48_s18, %s48_s18 }
  0x3e   :  { %p4019_p13 = scmp.ne.s32.totalorder %s48_s18, %s4018_s2  ;;  %p4024_p1 = scmp.lt.s32.totalorder %s4018_s2, %s4018_s2 }
  0x40   :  { %p4025_p2 = por %p4024_p1, %p4023_p0 }
  0x42   :  { %p4026_p3 = pnand %p4025_p2, %p4019_p13 }
  0x44   :  { %4029 = shalt.err (!%p4026_p3)
}
  0x45   :  { %53 = dma.hbm_to_vmem [thread:$0]  %s4285_s4, 6144, %s48_s18, [#allocation6], %s4085_s24, %s4085_s24, %s4086_s25  }
  0x46   :  { %s4030_s9 = scalar_lea.hbm %s4287_s6, 16 }
  0x47   :  { %p4031_p4 = scmp.ne.s32.totalorder %s4287_s6, %s4030_s9  ;;  %p4034_p5 = scmp.lt.u32.totalorder %s4030_s9, %s4287_s6 }
  0x49   :  { %p4036_p6 = pnand %p4034_p5, %p4031_p4 }
  0x4b   :  { %4039 = shalt.err (!%p4036_p6)
}
  0x4c   :  { %s4040_s13 = scalar_lea.vmem %s73_s20, 16  ;;  %s4044_s14 = scalar_lea.vmem %s73_s20, 32 }
  0x4d   :  { %p4041_p7 = scmp.ne.s32.totalorder %s73_s20, %s4040_s13  ;;  %p4045_p8 = scmp.lt.s32.totalorder %s73_s20, %s73_s20 }
  0x4e   :  { %p4046_p9 = scmp.lt.s32.totalorder %s4044_s14, %s4040_s13 }
  0x50   :  { %p4047_p10 = por %p4046_p9, %p4045_p8 }
  0x52   :  { %p4048_p11 = pnand %p4047_p10, %p4041_p7 }
  0x54   :  { %4051 = shalt.err (!%p4048_p11)
}
  0x55   :  { %75 = dma.hbm_to_vmem [thread:$0]  %s4287_s6, 16, %s73_s20, [#allocation9]  }
  0x56   :  { %4074 = dma.done.wait [#allocation3], 36864  }
  0x57   :  { %4075 = vsyncadd [#allocation3], 4294930432 }
  0x58   :  { %4076 = dma.done.wait [#allocation6], 6240  }
  0x59   :  { %4077 = vsyncadd [#allocation6], 4294961056 }
  0x5a   :  { %4078 = dma.done.wait [#allocation9], 1040  }
  0x5b   :  { %4079 = vsyncadd [#allocation9], 4294966256  ;;  %v3441_v0 = vld [vmem:[#allocation2 + $0x4] ss:$24 sps:$4 sm:$0xff]   ;;  %v3443_v1 = vld [vmem:[#allocation2] ss:$24 sps:$4 sm:$0xff]   ;;  %v100_v34 = vlaneseq }
  0x5c   :  { %1893 = vmatprep.subr.bf16.mxu0 %v3441_v0  ;;  %v3444_v2 = vld [vmem:[#allocation2 + $0x34] ss:$24 sps:$4 sm:$0xff]   ;;  %v3446_v3 = vld [vmem:[#allocation2 + $0x30] ss:$24 sps:$4 sm:$0xff]   ;;  %v3447_v4 = vld [vmem:[#allocation2 + $0x64] ss:$24 sps:$4 sm:$0xff]  }
  0x5d   :  { %1894 = vmatpush1.bf16.msra.mxu0 %v3443_v1  ;;  %v3449_v5 = vld [vmem:[#allocation2 + $0xc] ss:$24 sps:$4 sm:$0xff]   ;;  %v3452_v6 = vld [vmem:[#allocation2 + $0x8] ss:$24 sps:$4 sm:$0xff]   ;;  %v3455_v8 = vld [vmem:[#allocation2 + $0x3c] ss:$24 sps:$4 sm:$0xff]  }
  0x5e   :  { %1895 = vmatprep.subr.bf16.mxu0 %v3444_v2  ;;  %2016 = vmatprep.subr.bf16.mxu1 %v3449_v5  ;;  %v3451_v7 = vld [vmem:[#allocation2 + $0x60] ss:$24 sps:$4 sm:$0xff]   ;;  %v3453_v10 = vld [vmem:[#allocation2 + $0x94] ss:$24 sps:$4 sm:$0xff]   ;;  %v3457_v12 = vld [vmem:[#allocation2 + $0x90] ss:$24 sps:$4 sm:$0xff]  }
  0x5f   :  { %2017 = vmatpush1.bf16.msra.mxu1 %v3452_v6  ;;  %v3458_v9 = vld [vmem:[#allocation2 + $0x38] ss:$24 sps:$4 sm:$0xff]   ;;  %v3461_v11 = vld [vmem:[#allocation2 + $0x6c] ss:$24 sps:$4 sm:$0xff]   ;;  %v3464_v13 = vld [vmem:[#allocation2 + $0x68] ss:$24 sps:$4 sm:$0xff]  }
  0x60   :  { %2018 = vmatprep.subr.bf16.mxu1 %v3455_v8  ;;  %v3459_v14 = vld [vmem:[#allocation2 + $0xc4] ss:$24 sps:$4 sm:$0xff]   ;;  %v3463_v16 = vld [vmem:[#allocation2 + $0xc0] ss:$24 sps:$4 sm:$0xff]   ;;  %v3465_v17 = vld [vmem:[#allocation2 + $0xf4] ss:$24 sps:$4 sm:$0xff]  }
  0x61   :  { %1896 = vmatpush1.bf16.msra.mxu0 %v3446_v3  ;;  %v3467_v15 = vld [vmem:[#allocation2 + $0x9c] ss:$24 sps:$4 sm:$0xff]   ;;  %v3470_v18 = vld [vmem:[#allocation2 + $0x98] ss:$24 sps:$4 sm:$0xff]   ;;  %v3473_v19 = vld [vmem:[#allocation2 + $0xcc] ss:$24 sps:$4 sm:$0xff]  }
  0x62   :  { %1897 = vmatprep.subr.bf16.mxu0 %v3447_v4  ;;  %v3469_v20 = vld [vmem:[#allocation2 + $0xf0] ss:$24 sps:$4 sm:$0xff]   ;;  %v3471_v22 = vld [vmem:[#allocation2 + $0x124] ss:$24 sps:$4 sm:$0xff]   ;;  %v3475_v24 = vld [vmem:[#allocation2 + $0x120] ss:$24 sps:$4 sm:$0xff]  }
  0x63   :  { %2019 = vmatpush1.bf16.msra.mxu1 %v3458_v9  ;;  %v3476_v21 = vld [vmem:[#allocation2 + $0xc8] ss:$24 sps:$4 sm:$0xff]   ;;  %v3479_v23 = vld [vmem:[#allocation2 + $0xfc] ss:$24 sps:$4 sm:$0xff]   ;;  %v3482_v26 = vld [vmem:[#allocation2 + $0xf8] ss:$24 sps:$4 sm:$0xff]  }
  0x64   :  { %2020 = vmatprep.subr.bf16.mxu1 %v3461_v11  ;;  %v3477_v25 = vld [vmem:[#allocation2 + $0x154] ss:$24 sps:$4 sm:$0xff]   ;;  %v3481_v28 = vld [vmem:[#allocation2 + $0x150] ss:$24 sps:$4 sm:$0xff]   ;;  %v3483_v30 = vld [vmem:[#allocation2 + $0x184] ss:$24 sps:$4 sm:$0xff]  }
  0x65   :  { %1898 = vmatpush1.bf16.msra.mxu0 %v3451_v7  ;;  %v3485_v27 = vld [vmem:[#allocation2 + $0x12c] ss:$24 sps:$4 sm:$0xff]   ;;  %v3488_v29 = vld [vmem:[#allocation2 + $0x128] ss:$24 sps:$4 sm:$0xff]   ;;  %v3491_v31 = vld [vmem:[#allocation2 + $0x15c] ss:$24 sps:$4 sm:$0xff]  }
  0x66   :  { %1899 = vmatprep.subr.bf16.mxu0 %v3453_v10  ;;  %v4091_v32 = vmov 1983009808   ;;  %v3487_v35 = vld [vmem:[#allocation2 + $0x180] ss:$24 sps:$4 sm:$0xff]   ;;  %v3489_v36 = vld [vmem:[#allocation2 + $0x1b4] ss:$24 sps:$4 sm:$0xff]  }
  0x67   :  { %2021 = vmatpush1.bf16.msra.mxu1 %v3464_v13  ;;  %v98_v33 = vunpack.c.l.s4 %v4091_v32  ;;  %v3494_v37 = vld [vmem:[#allocation2 + $0x158] ss:$24 sps:$4 sm:$0xff]   ;;  %v3497_v38 = vld [vmem:[#allocation2 + $0x18c] ss:$24 sps:$4 sm:$0xff]   ;;  %v4201_v40 = vshrl.u32 %v100_v34, 7  ;;  %vm4093_vm0 = vmmov 0  }
  0x68   :  { %2022 = vmatprep.subr.bf16.mxu1 %v3467_v15  ;;  %v3493_v41 = vld [vmem:[#allocation2 + $0x1b0] ss:$24 sps:$4 sm:$0xff]   ;;  %v3495_v43 = vld [vmem:[#allocation2 + $0x1e4] ss:$24 sps:$4 sm:$0xff]   ;;  %v3499_v46 = vld [vmem:[#allocation2 + $0x1e0] ss:$24 sps:$4 sm:$0xff]  }
  0x69   :  { %1900 = vmatpush1.bf16.msra.mxu0 %v3457_v12  ;;  %v99_v39 = vunpack.c.0.s8 %v98_v33  ;;  %v3500_v42 = vld [vmem:[#allocation2 + $0x188] ss:$24 sps:$4 sm:$0xff]   ;;  %v3503_v44 = vld [vmem:[#allocation2 + $0x1bc] ss:$24 sps:$4 sm:$0xff]   ;;  %v3506_v48 = vld [vmem:[#allocation2 + $0x1b8] ss:$24 sps:$4 sm:$0xff]  }
  0x6a   :  { %1901 = vmatprep.subr.bf16.mxu0 %v3459_v14  ;;  %v3501_v47 = vld [vmem:[#allocation2 + $0x214] ss:$24 sps:$4 sm:$0xff]   ;;  %v92_v50 = vld [vmem:[%s4281_s0] sm:$0xff]  ;;  %v3505_v52 = vld [vmem:[#allocation2 + $0x210] ss:$24 sps:$4 sm:$0xff]  }
  0x6b   :  { %2023 = vmatpush1.bf16.msra.mxu1 %v3470_v18  ;;  %v102_v45 = vsub.s32 %v99_v39, %v4201_v40  ;;  %v3509_v49 = vld [vmem:[#allocation2 + $0x1ec] ss:$24 sps:$4 sm:$0xff]   ;;  %v3512_v54 = vld [vmem:[#allocation2 + $0x1e8] ss:$24 sps:$4 sm:$0xff]   ;;  %v3515_v56 = vld [vmem:[#allocation2 + $0x21c] ss:$24 sps:$4 sm:$0xff]   ;;  %v96_v2 = vcombine.high %v92_v50, %v92_v50 }
  0x6c   :  { %2024 = vmatprep.subr.bf16.mxu1 %v3473_v19  ;;  %v3507_v53 = vld [vmem:[#allocation2 + $0x244] ss:$24 sps:$4 sm:$0xff]   ;;  %v3511_v58 = vld [vmem:[#allocation2 + $0x240] ss:$24 sps:$4 sm:$0xff]   ;;  %v3513_v59 = vld [vmem:[#allocation2 + $0x274] ss:$24 sps:$4 sm:$0xff]  }
  0x6d   :  { %1902 = vmatpush1.bf16.msra.mxu0 %v3463_v16  ;;  %v103_v51 = vrot.slane %v92_v50, %v102_v45  ;;  %v3518_v60 = vld [vmem:[#allocation2 + $0x218] ss:$24 sps:$4 sm:$0xff]   ;;  %v3521_v61 = vld [vmem:[#allocation2 + $0x24c] ss:$24 sps:$4 sm:$0xff]   ;;  %v3524_v0 = vld [vmem:[#allocation2 + $0x248] ss:$24 sps:$4 sm:$0xff]   ;;  %v4211_v7 = vrot.slane %v96_v2, %v102_v45 }
  0x6e   :  { %1903 = vmatprep.subr.bf16.mxu0 %v3465_v17  ;;  %v3517_v62 = vld [vmem:[#allocation2 + $0x270] ss:$24 sps:$4 sm:$0xff]   ;;  %v3519_v63 = vld [vmem:[#allocation2 + $0x2a4] ss:$24 sps:$4 sm:$0xff]   ;;  %v3523_v3 = vld [vmem:[#allocation2 + $0x2a0] ss:$24 sps:$4 sm:$0xff]  }
  0x6f   :  { %2025 = vmatpush1.bf16.msra.mxu1 %v3476_v21  ;;  %v111_v55 = vcombine.high %v103_v51, %v103_v51  ;;  %v3527_v1 = vld [vmem:[#allocation2 + $0x27c] ss:$24 sps:$4 sm:$0xff]   ;;  %v3530_v5 = vld [vmem:[#allocation2 + $0x278] ss:$24 sps:$4 sm:$0xff]   ;;  %v3534_v6 = vld [vmem:[#allocation2 + $0x2ac] ss:$24 sps:$4 sm:$0xff]   ;;  %v112_v12 = vcombine.high %v4211_v7, %v4211_v7  ;;  %v4215_v14 = vpack.c.bf16 %v103_v51, %v103_v51 }
  0x70   :  { %2026 = vmatprep.subr.bf16.mxu1 %v3479_v23  ;;  %v3525_v4 = vld [vmem:[#allocation2 + $0x2d4] ss:$24 sps:$4 sm:$0xff]   ;;  %v3529_v8 = vld [vmem:[#allocation2 + $0x2d0] ss:$24 sps:$4 sm:$0xff]   ;;  %v3533_v9 = vld [vmem:[#allocation2 + $0x304] ss:$24 sps:$4 sm:$0xff]  }
  0x71   :  { %1904 = vmatpush1.bf16.msra.mxu0 %v3469_v20  ;;  %v4207_v57 = vpack.c.bf16 %v111_v55, %v111_v55  ;;  %v3536_v10 = vld [vmem:[#allocation2 + $0x2a8] ss:$24 sps:$4 sm:$0xff]   ;;  %v3540_v11 = vld [vmem:[#allocation2 + $0x2dc] ss:$24 sps:$4 sm:$0xff]   ;;  %v3542_v16 = vld [vmem:[#allocation2 + $0x2d8] ss:$24 sps:$4 sm:$0xff]   ;;  %v4217_v18 = vpack.c.bf16 %v112_v12, %v112_v12 }
  0x72   :  { %1905 = vmatprep.subr.bf16.mxu0 %v3471_v22  ;;  %v3531_v13 = vld [vmem:[#allocation2 + $0x300] ss:$24 sps:$4 sm:$0xff]   ;;  %v3539_v15 = vld [vmem:[#allocation2 + $0x334] ss:$24 sps:$4 sm:$0xff]   ;;  %v3537_v19 = vld [vmem:[#allocation2 + $0x330] ss:$24 sps:$4 sm:$0xff]  }
  0x73   :  { %2027 = vmatpush1.bf16.msra.mxu1 %v3482_v26  ;;  %1925 = vmatprep.mubr.bf16.mxu0 %v4207_v57  ;;  %v3548_v17 = vld [vmem:[#allocation2 + $0x30c] ss:$24 sps:$4 sm:$0xff]   ;;  %v3546_v21 = vld [vmem:[#allocation2 + $0x308] ss:$24 sps:$4 sm:$0xff]   ;;  %v3554_v22 = vld [vmem:[#allocation2 + $0x33c] ss:$24 sps:$4 sm:$0xff]  }
  0x74   :  { %2028 = vmatprep.subr.bf16.mxu1 %v3485_v27  ;;  %2048 = vmatprep.mubr.bf16.mxu1 %v4207_v57  ;;  %v3545_v20 = vld [vmem:[#allocation2 + $0x364] ss:$24 sps:$4 sm:$0xff]   ;;  %v3543_v23 = vld [vmem:[#allocation2 + $0x360] ss:$24 sps:$4 sm:$0xff]   ;;  %v3549_v27 = vld [vmem:[#allocation2 + $0x390] ss:$24 sps:$4 sm:$0xff]  }
  0x75   :  { %1906 = vmatpush1.bf16.msra.mxu0 %v3475_v24  ;;  %v3551_v24 = vld [vmem:[#allocation2 + $0x394] ss:$24 sps:$4 sm:$0xff]   ;;  %v3564_v33 = vld [vmem:[#allocation2 + $0x398] ss:$24 sps:$4 sm:$0xff]   ;;  %v3581_v45 = vld [vmem:[#allocation2 + $0x484] ss:$24 sps:$4 sm:$0xff]  }
  0x76   :  { %1907 = vmatprep.subr.bf16.mxu0 %v3477_v25  ;;  %v3552_v25 = vld [vmem:[#allocation2 + $0x338] ss:$24 sps:$4 sm:$0xff]   ;;  %v3560_v26 = vld [vmem:[#allocation2 + $0x36c] ss:$24 sps:$4 sm:$0xff]   ;;  %v3602_v55 = vld [vmem:[#allocation2 + $0x4bc] ss:$24 sps:$4 sm:$0xff]  }
  0x77   :  { %2029 = vmatpush1.bf16.msra.mxu1 %v3488_v29  ;;  %v3558_v29 = vld [vmem:[#allocation2 + $0x368] ss:$24 sps:$4 sm:$0xff]   ;;  %v3563_v32 = vld [vmem:[#allocation2 + $0x3f4] ss:$24 sps:$4 sm:$0xff]   ;;  %v3588_v50 = vld [vmem:[#allocation2 + $0x458] ss:$24 sps:$4 sm:$0xff]  }
  0x78   :  { %2030 = vmatprep.subr.bf16.mxu1 %v3491_v31  ;;  %v3555_v31 = vld [vmem:[#allocation2 + $0x3c0] ss:$24 sps:$4 sm:$0xff]   ;;  %v3572_v34 = vld [vmem:[#allocation2 + $0x3cc] ss:$24 sps:$4 sm:$0xff]  }
  0x79   :  { %1908 = vmatpush1.bf16.msra.mxu0 %v3481_v28  ;;  %v3557_v28 = vld [vmem:[#allocation2 + $0x3c4] ss:$24 sps:$4 sm:$0xff]   ;;  %v3567_v39 = vld [vmem:[#allocation2 + $0x420] ss:$24 sps:$4 sm:$0xff]   ;;  %v3611_v2 = vld [vmem:[#allocation2 + $0x574] ss:$24 sps:$4 sm:$0xff]  }
  0x7a   :  { %1909 = vmatprep.subr.bf16.mxu0 %v3483_v30  ;;  %v3566_v30 = vld [vmem:[#allocation2 + $0x39c] ss:$24 sps:$4 sm:$0xff]   ;;  %v3596_v51 = vld [vmem:[#allocation2 + $0x48c] ss:$24 sps:$4 sm:$0xff]   ;;  %v3624_v12 = vld [vmem:[#allocation2 + $0x578] ss:$24 sps:$4 sm:$0xff]  }
  0x7b   :  { %2031 = vmatpush1.bf16.msra.mxu1 %v3494_v37  ;;  %v3570_v37 = vld [vmem:[#allocation2 + $0x3c8] ss:$24 sps:$4 sm:$0xff]  }
  0x7c   :  { %2032 = vmatprep.subr.bf16.mxu1 %v3497_v38  ;;  %v3578_v38 = vld [vmem:[#allocation2 + $0x3fc] ss:$24 sps:$4 sm:$0xff]  }
  0x7d   :  { %1910 = vmatpush1.bf16.msra.mxu0 %v3487_v35  ;;  %v3561_v35 = vld [vmem:[#allocation2 + $0x3f0] ss:$24 sps:$4 sm:$0xff]  }
  0x7e   :  { %1911 = vmatprep.subr.bf16.mxu0 %v3489_v36  ;;  %v3569_v36 = vld [vmem:[#allocation2 + $0x424] ss:$24 sps:$4 sm:$0xff]  }
  0x7f   :  { %2033 = vmatpush1.bf16.msra.mxu1 %v3500_v42  ;;  %v3576_v42 = vld [vmem:[#allocation2 + $0x3f8] ss:$24 sps:$4 sm:$0xff]  }
  0x80   :  { %2034 = vmatprep.subr.bf16.mxu1 %v3503_v44  ;;  %v3573_v44 = vld [vmem:[#allocation2 + $0x450] ss:$24 sps:$4 sm:$0xff]  }
  0x81   :  { %1912 = vmatpush1.bf16.msra.mxu0 %v3493_v41  ;;  %v3575_v41 = vld [vmem:[#allocation2 + $0x454] ss:$24 sps:$4 sm:$0xff]  }
  0x82   :  { %1913 = vmatprep.subr.bf16.mxu0 %v3495_v43  ;;  %v3584_v43 = vld [vmem:[#allocation2 + $0x42c] ss:$24 sps:$4 sm:$0xff]  }
  0x83   :  { %2035 = vmatpush1.bf16.msra.mxu1 %v3506_v48  ;;  %v3579_v48 = vld [vmem:[#allocation2 + $0x480] ss:$24 sps:$4 sm:$0xff]  }
  0x84   :  { %2036 = vmatprep.subr.bf16.mxu1 %v3509_v49  ;;  %v3587_v49 = vld [vmem:[#allocation2 + $0x4b4] ss:$24 sps:$4 sm:$0xff]  }
  0x85   :  { %1914 = vmatpush1.bf16.msra.mxu0 %v3499_v46  ;;  %v3582_v46 = vld [vmem:[#allocation2 + $0x428] ss:$24 sps:$4 sm:$0xff]  }
  0x86   :  { %1915 = vmatprep.subr.bf16.mxu0 %v3501_v47  ;;  %v3590_v47 = vld [vmem:[#allocation2 + $0x45c] ss:$24 sps:$4 sm:$0xff]  }
  0x87   :  { %2037 = vmatpush1.bf16.msra.mxu1 %v3512_v54  ;;  %v3594_v54 = vld [vmem:[#allocation2 + $0x488] ss:$24 sps:$4 sm:$0xff]  }
  0x88   :  { %2038 = vmatprep.subr.bf16.mxu1 %v3515_v56  ;;  %v3591_v56 = vld [vmem:[#allocation2 + $0x4e0] ss:$24 sps:$4 sm:$0xff]  }
  0x89   :  { %1916 = vmatpush1.bf16.msra.mxu0 %v3505_v52  ;;  %v3585_v52 = vld [vmem:[#allocation2 + $0x4b0] ss:$24 sps:$4 sm:$0xff]  }
  0x8a   :  { %1917 = vmatprep.subr.bf16.mxu0 %v3507_v53  ;;  %v3593_v53 = vld [vmem:[#allocation2 + $0x4e4] ss:$24 sps:$4 sm:$0xff]  }
  0x8b   :  { %2039 = vmatpush1.bf16.msra.mxu1 %v3518_v60  ;;  %v3608_v60 = vld [vmem:[#allocation2 + $0x4ec] ss:$24 sps:$4 sm:$0xff]  }
  0x8c   :  { %2040 = vmatprep.subr.bf16.mxu1 %v3521_v61  ;;  %v3597_v61 = vld [vmem:[#allocation2 + $0x510] ss:$24 sps:$4 sm:$0xff]  }
  0x8d   :  { %1918 = vmatpush1.bf16.msra.mxu0 %v3511_v58  ;;  %v3599_v58 = vld [vmem:[#allocation2 + $0x514] ss:$24 sps:$4 sm:$0xff]  }
  0x8e   :  { %1919 = vmatprep.subr.bf16.mxu0 %v3513_v59  ;;  %v3600_v59 = vld [vmem:[#allocation2 + $0x4b8] ss:$24 sps:$4 sm:$0xff]  }
  0x8f   :  { %2041 = vmatpush1.bf16.msra.mxu1 %v3524_v0  ;;  %v3614_v0 = vld [vmem:[#allocation2 + $0x51c] ss:$24 sps:$4 sm:$0xff]  }
  0x90   :  { %2042 = vmatprep.subr.bf16.mxu1 %v3527_v1  ;;  %v3603_v1 = vld [vmem:[#allocation2 + $0x540] ss:$24 sps:$4 sm:$0xff]  }
  0x91   :  { %1920 = vmatpush1.bf16.msra.mxu0 %v3517_v62  ;;  %v3605_v62 = vld [vmem:[#allocation2 + $0x544] ss:$24 sps:$4 sm:$0xff]  }
  0x92   :  { %1921 = vmatprep.subr.bf16.mxu0 %v3519_v63  ;;  %v3606_v63 = vld [vmem:[#allocation2 + $0x4e8] ss:$24 sps:$4 sm:$0xff]  }
  0x93   :  { %2043 = vmatpush1.bf16.msra.mxu1 %v3530_v5  ;;  %v3609_v5 = vld [vmem:[#allocation2 + $0x570] ss:$24 sps:$4 sm:$0xff]  }
  0x94   :  { %2044 = vmatprep.subr.bf16.mxu1 %v3534_v6  ;;  %v3617_v6 = vld [vmem:[#allocation2 + $0x5a4] ss:$24 sps:$4 sm:$0xff]  }
  0x95   :  { %1922 = vmatpush1.bf16.msra.mxu0 %v3523_v3  ;;  %v3612_v3 = vld [vmem:[#allocation2 + $0x518] ss:$24 sps:$4 sm:$0xff]  }
  0x96   :  { %1923 = vmatprep.subr.bf16.mxu0 %v3525_v4  ;;  %v3620_v4 = vld [vmem:[#allocation2 + $0x54c] ss:$24 sps:$4 sm:$0xff]  }
  0x97   :  { %2045 = vmatpush1.bf16.msra.mxu1 %v3536_v10  ;;  %v3615_v10 = vld [vmem:[#allocation2 + $0x5a0] ss:$24 sps:$4 sm:$0xff]  }
  0x98   :  { %2046 = vmatprep.subr.bf16.mxu1 %v3540_v11  ;;  %v3623_v11 = vld [vmem:[#allocation2 + $0x5d4] ss:$24 sps:$4 sm:$0xff]  }
  0x99   :  { %1924 = vmatpush1.bf16.msra.mxu0 %v3529_v8  ;;  %v3618_v8 = vld [vmem:[#allocation2 + $0x548] ss:$24 sps:$4 sm:$0xff]  }
  0x9a   :  { %1934 = vmatprep.subr.bf16.mxu0 %v3533_v9  ;;  %v3626_v9 = vld [vmem:[#allocation2 + $0x57c] ss:$24 sps:$4 sm:$0xff]  }
  0x9b   :  { %2047 = vmatpush1.bf16.msra.mxu1 %v3542_v16  ;;  %v3630_v16 = vld [vmem:[#allocation2 + $0x604] ss:$24 sps:$4 sm:$0xff]  }
  0x9c   :  { %1926 = vmatmul.mubr.bf16.vlgmr.msra.gmra.mrb[0].mxu0 %v4215_v14  ;;  %2057 = vmatprep.subr.bf16.mxu1 %v3548_v17  ;;  %v3631_v17 = vld [vmem:[#allocation2 + $0x5a8] ss:$24 sps:$4 sm:$0xff]  }
  0x9d   :  { %1935 = vmatpush1.bf16.msra.mxu0 %v3531_v13  ;;  %1966 = vmatprep.mubr.bf16.mxu0 %v4217_v18  ;;  %v3633_v13 = vld [vmem:[#allocation2 + $0x5ac] ss:$24 sps:$4 sm:$0xff]  }
  0x9e   :  { %1936 = vmatprep.subr.bf16.mxu0 %v3539_v15  ;;  %2049 = vmatmul.mubr.bf16.vlgmr.msra.gmra.mrb[0].mxu1 %v4215_v14  ;;  %v3621_v15 = vld [vmem:[#allocation2 + $0x5d0] ss:$24 sps:$4 sm:$0xff]  }
  0x9f   :  { %2058 = vmatpush1.bf16.msra.mxu1 %v3546_v21  ;;  %2089 = vmatprep.mubr.bf16.mxu1 %v4217_v18  ;;  %v4230_v21 = vld.sshfl [vmem:[%s4281_s0 + $0x8] sm:$0x33 pattern:$0x76325410] }
  0xa0   :  { %2059 = vmatprep.subr.bf16.mxu1 %v3554_v22  ;;  %v3628_v22 = vld [vmem:[#allocation2 + $0x600] ss:$24 sps:$4 sm:$0xff]  }
  0xa1   :  { %1937 = vmatpush1.bf16.msra.mxu0 %v3537_v19  ;;  %v3639_v19 = vld [vmem:[#allocation2 + $0x5dc] ss:$24 sps:$4 sm:$0xff]  }
  0xa2   :  { %1938 = vmatprep.subr.bf16.mxu0 %v3545_v20  ;;  %v4225_v20 = vpack.c.bf16 %v4211_v7, %v4211_v7  ;;  %v3634_v7 = vld [vmem:[#allocation2 + $0x630] ss:$24 sps:$4 sm:$0xff]  }
  0xa3   :  { %2060 = vmatpush1.bf16.msra.mxu1 %v3552_v25  ;;  %v3636_v25 = vld [vmem:[#allocation2 + $0x634] ss:$24 sps:$4 sm:$0xff]  }
  0xa4   :  { %2061 = vmatprep.subr.bf16.mxu1 %v3560_v26  ;;  %v3645_v26 = vld [vmem:[#allocation2 + $0x60c] ss:$24 sps:$4 sm:$0xff]  }
  0xa5   :  { %1939 = vmatpush1.bf16.msra.mxu0 %v3543_v23  ;;  %v3637_v23 = vld [vmem:[#allocation2 + $0x5d8] ss:$24 sps:$4 sm:$0xff]  }
  0xa6   :  { %1940 = vmatprep.subr.bf16.mxu0 %v3551_v24  ;;  %v120_v24 = vcombine.high %v4230_v21, %v4230_v21 }
  0xa7   :  { %2062 = vmatpush1.bf16.msra.mxu1 %v3558_v29  ;;  %v3642_v29 = vld [vmem:[#allocation2 + $0x664] ss:$24 sps:$4 sm:$0xff]  }
  0xa8   :  { %2063 = vmatprep.subr.bf16.mxu1 %v3566_v30  ;;  %v3651_v30 = vld [vmem:[#allocation2 + $0x63c] ss:$24 sps:$4 sm:$0xff]  }
  0xa9   :  { %1941 = vmatpush1.bf16.msra.mxu0 %v3549_v27  ;;  %v4234_v27 = vpack.c.bf16 %v120_v24, %v120_v24  ;;  %v3721_v24 = vld [vmem:[#allocation2 + $0x878] ss:$24 sps:$4 sm:$0xff]  }
  0xaa   :  { %1942 = vmatprep.subr.bf16.mxu0 %v3557_v28  ;;  %v3643_v28 = vld [vmem:[#allocation2 + $0x608] ss:$24 sps:$4 sm:$0xff]  }
  0xab   :  { %2064 = vmatpush1.bf16.msra.mxu1 %v3564_v33  ;;  %v3648_v33 = vld [vmem:[#allocation2 + $0x694] ss:$24 sps:$4 sm:$0xff]  }
  0xac   :  { %2065 = vmatprep.subr.bf16.mxu1 %v3572_v34  ;;  %v3657_v34 = vld [vmem:[#allocation2 + $0x66c] ss:$24 sps:$4 sm:$0xff]  }
  0xad   :  { %1943 = vmatpush1.bf16.msra.mxu0 %v3555_v31  ;;  %v3640_v31 = vld [vmem:[#allocation2 + $0x660] ss:$24 sps:$4 sm:$0xff]  }
  0xae   :  { %1944 = vmatprep.subr.bf16.mxu0 %v3563_v32  ;;  %v3649_v32 = vld [vmem:[#allocation2 + $0x638] ss:$24 sps:$4 sm:$0xff]  }
  0xaf   :  { %2066 = vmatpush1.bf16.msra.mxu1 %v3570_v37  ;;  %v3654_v37 = vld [vmem:[#allocation2 + $0x6c4] ss:$24 sps:$4 sm:$0xff]  }
  0xb0   :  { %2067 = vmatprep.subr.bf16.mxu1 %v3578_v38  ;;  %v3663_v38 = vld [vmem:[#allocation2 + $0x69c] ss:$24 sps:$4 sm:$0xff]  }
  0xb1   :  { %1945 = vmatpush1.bf16.msra.mxu0 %v3561_v35  ;;  %v3646_v35 = vld [vmem:[#allocation2 + $0x690] ss:$24 sps:$4 sm:$0xff]  }
  0xb2   :  { %1946 = vmatprep.subr.bf16.mxu0 %v3569_v36  ;;  %v3655_v36 = vld [vmem:[#allocation2 + $0x668] ss:$24 sps:$4 sm:$0xff]  }
  0xb3   :  { %2068 = vmatpush1.bf16.msra.mxu1 %v3576_v42  ;;  %v3660_v42 = vld [vmem:[#allocation2 + $0x6f4] ss:$24 sps:$4 sm:$0xff]  }
  0xb4   :  { %2069 = vmatprep.subr.bf16.mxu1 %v3584_v43  ;;  %v3669_v43 = vld [vmem:[#allocation2 + $0x6cc] ss:$24 sps:$4 sm:$0xff]  }
  0xb5   :  { %1947 = vmatpush1.bf16.msra.mxu0 %v3567_v39  ;;  %v3652_v39 = vld [vmem:[#allocation2 + $0x6c0] ss:$24 sps:$4 sm:$0xff]  }
  0xb6   :  { %1948 = vmatprep.subr.bf16.mxu0 %v3575_v41  ;;  %v3661_v41 = vld [vmem:[#allocation2 + $0x698] ss:$24 sps:$4 sm:$0xff]  }
  0xb7   :  { %2070 = vmatpush1.bf16.msra.mxu1 %v3582_v46  ;;  %v3666_v46 = vld [vmem:[#allocation2 + $0x724] ss:$24 sps:$4 sm:$0xff]  }
  0xb8   :  { %2071 = vmatprep.subr.bf16.mxu1 %v3590_v47  ;;  %v3675_v47 = vld [vmem:[#allocation2 + $0x6fc] ss:$24 sps:$4 sm:$0xff]  }
  0xb9   :  { %1949 = vmatpush1.bf16.msra.mxu0 %v3573_v44  ;;  %v3658_v44 = vld [vmem:[#allocation2 + $0x6f0] ss:$24 sps:$4 sm:$0xff]  }
  0xba   :  { %1950 = vmatprep.subr.bf16.mxu0 %v3581_v45  ;;  %v3667_v45 = vld [vmem:[#allocation2 + $0x6c8] ss:$24 sps:$4 sm:$0xff]  }
  0xbb   :  { %2072 = vmatpush1.bf16.msra.mxu1 %v3588_v50  ;;  %v3672_v50 = vld [vmem:[#allocation2 + $0x754] ss:$24 sps:$4 sm:$0xff]  }
  0xbc   :  { %2073 = vmatprep.subr.bf16.mxu1 %v3596_v51  ;;  %v3681_v51 = vld [vmem:[#allocation2 + $0x72c] ss:$24 sps:$4 sm:$0xff]  }
  0xbd   :  { %1951 = vmatpush1.bf16.msra.mxu0 %v3579_v48  ;;  %v3664_v48 = vld [vmem:[#allocation2 + $0x720] ss:$24 sps:$4 sm:$0xff]  }
  0xbe   :  { %1952 = vmatprep.subr.bf16.mxu0 %v3587_v49  ;;  %v3673_v49 = vld [vmem:[#allocation2 + $0x6f8] ss:$24 sps:$4 sm:$0xff]  }
  0xbf   :  { %2074 = vmatpush1.bf16.msra.mxu1 %v3594_v54  ;;  %v3678_v54 = vld [vmem:[#allocation2 + $0x784] ss:$24 sps:$4 sm:$0xff]  }
  0xc0   :  { %2075 = vmatprep.subr.bf16.mxu1 %v3602_v55  ;;  %v3687_v55 = vld [vmem:[#allocation2 + $0x75c] ss:$24 sps:$4 sm:$0xff]  }
  0xc1   :  { %1953 = vmatpush1.bf16.msra.mxu0 %v3585_v52  ;;  %v3670_v52 = vld [vmem:[#allocation2 + $0x750] ss:$24 sps:$4 sm:$0xff]  }
  0xc2   :  { %1954 = vmatprep.subr.bf16.mxu0 %v3593_v53  ;;  %v3679_v53 = vld [vmem:[#allocation2 + $0x728] ss:$24 sps:$4 sm:$0xff]  }
  0xc3   :  { %2076 = vmatpush1.bf16.msra.mxu1 %v3600_v59  ;;  %v3684_v59 = vld [vmem:[#allocation2 + $0x7b4] ss:$24 sps:$4 sm:$0xff]  }
  0xc4   :  { %2077 = vmatprep.subr.bf16.mxu1 %v3608_v60  ;;  %v3693_v60 = vld [vmem:[#allocation2 + $0x78c] ss:$24 sps:$4 sm:$0xff]  }
  0xc5   :  { %1955 = vmatpush1.bf16.msra.mxu0 %v3591_v56  ;;  %v3676_v56 = vld [vmem:[#allocation2 + $0x780] ss:$24 sps:$4 sm:$0xff]  }
  0xc6   :  { %1956 = vmatprep.subr.bf16.mxu0 %v3599_v58  ;;  %v3685_v58 = vld [vmem:[#allocation2 + $0x758] ss:$24 sps:$4 sm:$0xff]  }
  0xc7   :  { %2078 = vmatpush1.bf16.msra.mxu1 %v3606_v63  ;;  %v3691_v63 = vld [vmem:[#allocation2 + $0x788] ss:$24 sps:$4 sm:$0xff]  }
  0xc8   :  { %2079 = vmatprep.subr.bf16.mxu1 %v3614_v0  ;;  %v3699_v0 = vld [vmem:[#allocation2 + $0x7bc] ss:$24 sps:$4 sm:$0xff]  }
  0xc9   :  { %1957 = vmatpush1.bf16.msra.mxu0 %v3597_v61  ;;  %v3682_v61 = vld [vmem:[#allocation2 + $0x7b0] ss:$24 sps:$4 sm:$0xff]  }
  0xca   :  { %1958 = vmatprep.subr.bf16.mxu0 %v3605_v62  ;;  %v3690_v62 = vld [vmem:[#allocation2 + $0x7e4] ss:$24 sps:$4 sm:$0xff]  }
  0xcb   :  { %2080 = vmatpush1.bf16.msra.mxu1 %v3612_v3  ;;  %v3697_v3 = vld [vmem:[#allocation2 + $0x7b8] ss:$24 sps:$4 sm:$0xff]  }
  0xcc   :  { %2081 = vmatprep.subr.bf16.mxu1 %v3620_v4  ;;  %v3705_v4 = vld [vmem:[#allocation2 + $0x7ec] ss:$24 sps:$4 sm:$0xff]  }
  0xcd   :  { %1959 = vmatpush1.bf16.msra.mxu0 %v3603_v1  ;;  %v3688_v1 = vld [vmem:[#allocation2 + $0x7e0] ss:$24 sps:$4 sm:$0xff]  }
  0xce   :  { %1960 = vmatprep.subr.bf16.mxu0 %v3611_v2  ;;  %v3696_v2 = vld [vmem:[#allocation2 + $0x814] ss:$24 sps:$4 sm:$0xff]  }
  0xcf   :  { %2082 = vmatpush1.bf16.msra.mxu1 %v3618_v8  ;;  %v3703_v8 = vld [vmem:[#allocation2 + $0x7e8] ss:$24 sps:$4 sm:$0xff]  }
  0xd0   :  { %2083 = vmatprep.subr.bf16.mxu1 %v3626_v9  ;;  %v3711_v9 = vld [vmem:[#allocation2 + $0x81c] ss:$24 sps:$4 sm:$0xff]  }
  0xd1   :  { %1961 = vmatpush1.bf16.msra.mxu0 %v3609_v5  ;;  %v3694_v5 = vld [vmem:[#allocation2 + $0x810] ss:$24 sps:$4 sm:$0xff]  }
  0xd2   :  { %1962 = vmatprep.subr.bf16.mxu0 %v3617_v6  ;;  %v3702_v6 = vld [vmem:[#allocation2 + $0x844] ss:$24 sps:$4 sm:$0xff]  }
  0xd3   :  { %2084 = vmatpush1.bf16.msra.mxu1 %v3624_v12  ;;  %v3709_v12 = vld [vmem:[#allocation2 + $0x818] ss:$24 sps:$4 sm:$0xff]  }
  0xd4   :  { %2085 = vmatprep.subr.bf16.mxu1 %v3633_v13  ;;  %v3717_v13 = vld [vmem:[#allocation2 + $0x84c] ss:$24 sps:$4 sm:$0xff]  }
  0xd5   :  { %1963 = vmatpush1.bf16.msra.mxu0 %v3615_v10  ;;  %v3700_v10 = vld [vmem:[#allocation2 + $0x840] ss:$24 sps:$4 sm:$0xff]  }
  0xd6   :  { %1964 = vmatprep.subr.bf16.mxu0 %v3623_v11  ;;  %v3708_v11 = vld [vmem:[#allocation2 + $0x874] ss:$24 sps:$4 sm:$0xff]  }
  0xd7   :  { %2086 = vmatpush1.bf16.msra.mxu1 %v3631_v17  ;;  %v3715_v17 = vld [vmem:[#allocation2 + $0x848] ss:$24 sps:$4 sm:$0xff]  }
  0xd8   :  { %2087 = vmatprep.subr.bf16.mxu1 %v3639_v19  ;;  %v3723_v19 = vld [vmem:[#allocation2 + $0x87c] ss:$24 sps:$4 sm:$0xff]  }
  0xd9   :  { %1965 = vmatpush1.bf16.msra.mxu0 %v3621_v15  ;;  %v3706_v15 = vld [vmem:[#allocation2 + $0x870] ss:$24 sps:$4 sm:$0xff]  }
  0xda   :  { %1975 = vmatprep.subr.bf16.mxu0 %v3630_v16  ;;  %v3714_v16 = vld [vmem:[#allocation2 + $0x8a4] ss:$24 sps:$4 sm:$0xff]  }
  0xdb   :  { %2088 = vmatpush1.bf16.msra.mxu1 %v3637_v23  ;;  %v3720_v23 = vld [vmem:[#allocation2 + $0x8d4] ss:$24 sps:$4 sm:$0xff]  }
  0xdc   :  { %1967 = vmatmul.mubr.bf16.vlgmr.msra.gmra.mrb[0].mxu0 %v4225_v20  ;;  %2098 = vmatprep.subr.bf16.mxu1 %v3645_v26  ;;  %v3718_v26 = vld [vmem:[#allocation2 + $0x8d0] ss:$24 sps:$4 sm:$0xff]  }
  0xdd   :  { %1976 = vmatpush1.bf16.msra.mxu0 %v3628_v22  ;;  %2007 = vmatprep.mubr.bf16.mxu0 %v4234_v27  ;;  %v3712_v22 = vld [vmem:[#allocation2 + $0x8a0] ss:$24 sps:$4 sm:$0xff]  }
  0xde   :  { %1977 = vmatprep.subr.bf16.mxu0 %v3636_v25  ;;  %2090 = vmatmul.mubr.bf16.vlgmr.msra.gmra.mrb[0].mxu1 %v4225_v20  ;;  %v3726_v25 = vld [vmem:[#allocation2 + $0x8ac] ss:$24 sps:$4 sm:$0xff]  }
  0xdf   :  { %2099 = vmatpush1.bf16.msra.mxu1 %v3643_v28  ;;  %2130 = vmatprep.mubr.bf16.mxu1 %v4234_v27  ;;  %v3729_v28 = vld [vmem:[#allocation2 + $0x14] ss:$24 sps:$4 sm:$0xff]  }
  0xe0   :  { %2100 = vmatprep.subr.bf16.mxu1 %v3651_v30  ;;  %v3727_v30 = vld [vmem:[#allocation2 + $0x10] ss:$24 sps:$4 sm:$0xff]  }
  0xe1   :  { %1978 = vmatpush1.bf16.msra.mxu0 %v3634_v7  ;;  %v3724_v7 = vld [vmem:[#allocation2 + $0x8a8] ss:$24 sps:$4 sm:$0xff]  }
  0xe2   :  { %1979 = vmatprep.subr.bf16.mxu0 %v3642_v29  ;;  %v3732_v29 = vld [vmem:[#allocation2 + $0x8dc] ss:$24 sps:$4 sm:$0xff]  }
  0xe3   :  { %2101 = vmatpush1.bf16.msra.mxu1 %v3649_v32  ;;  %v3730_v32 = vld [vmem:[#allocation2 + $0x8d8] ss:$24 sps:$4 sm:$0xff]  }
  0xe4   :  { %2102 = vmatprep.subr.bf16.mxu1 %v3657_v34  ;;  %v3733_v34 = vld [vmem:[#allocation2 + $0x40] ss:$24 sps:$4 sm:$0xff]  }
  0xe5   :  { %1980 = vmatpush1.bf16.msra.mxu0 %v3640_v31  ;;  %v4242_v31 = vpack.c.bf16 %v4230_v21, %v4230_v21  ;;  %v3736_v21 = vld [vmem:[#allocation2 + $0x70] ss:$24 sps:$4 sm:$0xff]  }
  0xe6   :  { %1981 = vmatprep.subr.bf16.mxu0 %v3648_v33  ;;  %v3735_v33 = vld [vmem:[#allocation2 + $0x44] ss:$24 sps:$4 sm:$0xff]  }
  0xe7   :  { %2103 = vmatpush1.bf16.msra.mxu1 %v3655_v36  ;;  %v3741_v36 = vld [vmem:[#allocation2 + $0xa4] ss:$24 sps:$4 sm:$0xff]  }
  0xe8   :  { %2104 = vmatprep.subr.bf16.mxu1 %v3663_v38  ;;  %v3744_v38 = vld [vmem:[#allocation2 + $0xd4] ss:$24 sps:$4 sm:$0xff]  }
  0xe9   :  { %1982 = vmatpush1.bf16.msra.mxu0 %v3646_v35  ;;  %v3738_v35 = vld [vmem:[#allocation2 + $0x74] ss:$24 sps:$4 sm:$0xff]  }
  0xea   :  { %1983 = vmatprep.subr.bf16.mxu0 %v3654_v37  ;;  %v3739_v37 = vld [vmem:[#allocation2 + $0xa0] ss:$24 sps:$4 sm:$0xff]  }
  0xeb   :  { %2105 = vmatpush1.bf16.msra.mxu1 %v3661_v41  ;;  %v3747_v41 = vld [vmem:[#allocation2 + $0x104] ss:$24 sps:$4 sm:$0xff]  }
  0xec   :  { %2106 = vmatprep.subr.bf16.mxu1 %v3669_v43  ;;  %v3750_v43 = vld [vmem:[#allocation2 + $0x134] ss:$24 sps:$4 sm:$0xff]  }
  0xed   :  { %1984 = vmatpush1.bf16.msra.mxu0 %v3652_v39  ;;  %v3742_v39 = vld [vmem:[#allocation2 + $0xd0] ss:$24 sps:$4 sm:$0xff]  }
  0xee   :  { %1985 = vmatprep.subr.bf16.mxu0 %v3660_v42  ;;  %v3745_v42 = vld [vmem:[#allocation2 + $0x100] ss:$24 sps:$4 sm:$0xff]  }
  0xef   :  { %2107 = vmatpush1.bf16.msra.mxu1 %v3667_v45  ;;  %v3751_v45 = vld [vmem:[#allocation2 + $0x160] ss:$24 sps:$4 sm:$0xff]  }
  0xf0   :  { %2108 = vmatprep.subr.bf16.mxu1 %v3675_v47  ;;  %v3754_v47 = vld [vmem:[#allocation2 + $0x190] ss:$24 sps:$4 sm:$0xff]  }
  0xf1   :  { %1986 = vmatpush1.bf16.msra.mxu0 %v3658_v44  ;;  %v3753_v44 = vld [vmem:[#allocation2 + $0x164] ss:$24 sps:$4 sm:$0xff]  }
  0xf2   :  { %1987 = vmatprep.subr.bf16.mxu0 %v3666_v46  ;;  %v3756_v46 = vld [vmem:[#allocation2 + $0x194] ss:$24 sps:$4 sm:$0xff]  }
  0xf3   :  { %2109 = vmatpush1.bf16.msra.mxu1 %v3673_v49  ;;  %v3757_v49 = vld [vmem:[#allocation2 + $0x1c0] ss:$24 sps:$4 sm:$0xff]  }
  0xf4   :  { %2110 = vmatprep.subr.bf16.mxu1 %v3681_v51  ;;  %v3760_v51 = vld [vmem:[#allocation2 + $0x1f0] ss:$24 sps:$4 sm:$0xff]  }
  0xf5   :  { %1988 = vmatpush1.bf16.msra.mxu0 %v3664_v48  ;;  %v3759_v48 = vld [vmem:[#allocation2 + $0x1c4] ss:$24 sps:$4 sm:$0xff]  }
  0xf6   :  { %1989 = vmatprep.subr.bf16.mxu0 %v3672_v50  ;;  %v3762_v50 = vld [vmem:[#allocation2 + $0x1f4] ss:$24 sps:$4 sm:$0xff]  }
  0xf7   :  { %2111 = vmatpush1.bf16.msra.mxu1 %v3679_v53  ;;  %v3763_v53 = vld [vmem:[#allocation2 + $0x220] ss:$24 sps:$4 sm:$0xff]  }
  0xf8   :  { %2112 = vmatprep.subr.bf16.mxu1 %v3687_v55  ;;  %v3766_v55 = vld [vmem:[#allocation2 + $0x250] ss:$24 sps:$4 sm:$0xff]  }
  0xf9   :  { %1990 = vmatpush1.bf16.msra.mxu0 %v3670_v52  ;;  %v3765_v52 = vld [vmem:[#allocation2 + $0x224] ss:$24 sps:$4 sm:$0xff]  }
  0xfa   :  { %1991 = vmatprep.subr.bf16.mxu0 %v3678_v54  ;;  %v3768_v54 = vld [vmem:[#allocation2 + $0x254] ss:$24 sps:$4 sm:$0xff]  }
  0xfb   :  { %2113 = vmatpush1.bf16.msra.mxu1 %v3685_v58  ;;  %v3769_v58 = vld [vmem:[#allocation2 + $0x280] ss:$24 sps:$4 sm:$0xff]  }
  0xfc   :  { %2114 = vmatprep.subr.bf16.mxu1 %v3693_v60  ;;  %v4092_v60 = vmov 0.0  }
  0xfd   :  { %1992 = vmatpush1.bf16.msra.mxu0 %v3676_v56  ;;  %v3771_v56 = vld [vmem:[#allocation2 + $0x284] ss:$24 sps:$4 sm:$0xff]  }
  0xfe   :  { %1993 = vmatprep.subr.bf16.mxu0 %v3684_v59  ;;  %v3774_v59 = vld [vmem:[#allocation2 + $0x2b4] ss:$24 sps:$4 sm:$0xff]  }
  0xff   :  { %2115 = vmatpush1.bf16.msra.mxu1 %v3691_v63  ;;  %v3777_v63 = vld [vmem:[#allocation2 + $0x2e4] ss:$24 sps:$4 sm:$0xff]  }
 0x100   :  { %2116 = vmatprep.subr.bf16.mxu1 %v3699_v0  ;;  %v3872_v0 = vld [vmem:[#allocation8 + $0x8] sm:$0xff]  }
 0x101   :  { %1994 = vmatpush1.bf16.msra.mxu0 %v3682_v61  ;;  %v3868_v61 = vld [vmem:[#allocation8] sm:$0xff]  }
 0x102   :  { %1995 = vmatprep.subr.bf16.mxu0 %v3690_v62  ;;  %v3772_v62 = vld [vmem:[#allocation2 + $0x2b0] ss:$24 sps:$4 sm:$0xff]  }
 0x103   :  { %2117 = vmatpush1.bf16.msra.mxu1 %v3697_v3  ;;  %v3876_v3 = vld [vmem:[#allocation8 + $0x10] sm:$0xff]  }
 0x104   :  { %2118 = vmatprep.subr.bf16.mxu1 %v3705_v4  ;;  %v3778_v4 = vld [vmem:[#allocation2 + $0x310] ss:$24 sps:$4 sm:$0xff]  }
 0x105   :  { %1996 = vmatpush1.bf16.msra.mxu0 %v3688_v1  ;;  %v3775_v1 = vld [vmem:[#allocation2 + $0x2e0] ss:$24 sps:$4 sm:$0xff]  }
 0x106   :  { %1997 = vmatprep.subr.bf16.mxu0 %v3696_v2  ;;  %v3780_v2 = vld [vmem:[#allocation2 + $0x314] ss:$24 sps:$4 sm:$0xff]  }
 0x107   :  { %2119 = vmatpush1.bf16.msra.mxu1 %v3703_v8  ;;  %v3781_v8 = vld [vmem:[#allocation2 + $0x340] ss:$24 sps:$4 sm:$0xff]  }
 0x108   :  { %2120 = vmatprep.subr.bf16.mxu1 %v3711_v9  ;;  %v3786_v9 = vld [vmem:[#allocation2 + $0x374] ss:$24 sps:$4 sm:$0xff]  }
 0x109   :  { %1998 = vmatpush1.bf16.msra.mxu0 %v3694_v5  ;;  %v3783_v5 = vld [vmem:[#allocation2 + $0x344] ss:$24 sps:$4 sm:$0xff]  }
 0x10a   :  { %1999 = vmatprep.subr.bf16.mxu0 %v3702_v6  ;;  %v3877_v6 = vld [vmem:[#allocation8 + $0x18] sm:$0xff]  }
 0x10b   :  { %2121 = vmatpush1.bf16.msra.mxu1 %v3709_v12  ;;  %v3789_v12 = vld [vmem:[#allocation2 + $0x3a4] ss:$24 sps:$4 sm:$0xff]  }
 0x10c   :  { %2122 = vmatprep.subr.bf16.mxu1 %v3717_v13  ;;  %v3879_v13 = vld [vmem:[#allocation8 + $0x28] sm:$0xff]  }
 0x10d   :  { %2000 = vmatpush1.bf16.msra.mxu0 %v3700_v10  ;;  %v3878_v10 = vld [vmem:[#allocation8 + $0x20] sm:$0xff]  }
 0x10e   :  { %2001 = vmatprep.subr.bf16.mxu0 %v3708_v11  ;;  %v3784_v11 = vld [vmem:[#allocation2 + $0x370] ss:$24 sps:$4 sm:$0xff]  }
 0x10f   :  { %2123 = vmatpush1.bf16.msra.mxu1 %v3715_v17  ;;  %v3795_v17 = vld [vmem:[#allocation2 + $0x404] ss:$24 sps:$4 sm:$0xff]  }
 0x110   :  { %2124 = vmatprep.subr.bf16.mxu1 %v3723_v19  ;;  %v3881_v19 = vld [vmem:[#allocation8 + $0x38] sm:$0xff]  }
 0x111   :  { %2002 = vmatpush1.bf16.msra.mxu0 %v3706_v15  ;;  %v3787_v15 = vld [vmem:[#allocation2 + $0x3a0] ss:$24 sps:$4 sm:$0xff]  }
 0x112   :  { %2003 = vmatprep.subr.bf16.mxu0 %v3714_v16  ;;  %v3880_v16 = vld [vmem:[#allocation8 + $0x30] sm:$0xff]  }
 0x113   :  { %2125 = vmatpush1.bf16.msra.mxu1 %v3721_v24  ;;  %v3882_v24 = vld [vmem:[#allocation7 + $0x40] sm:$0xff]  }
 0x114   :  { %2126 = vmatprep.subr.bf16.mxu1 %v3726_v25  ;;  %v3883_v25 = vld [vmem:[#allocation7] sm:$0xff]  }
 0x115   :  { %2004 = vmatpush1.bf16.msra.mxu0 %v3712_v22  ;;  %v3793_v22 = vld [vmem:[#allocation2 + $0x400] ss:$24 sps:$4 sm:$0xff]  }
 0x116   :  { %2005 = vmatprep.subr.bf16.mxu0 %v3720_v23  ;;  %v3798_v23 = vld [vmem:[#allocation2 + $0x434] ss:$24 sps:$4 sm:$0xff]  }
 0x117   :  { %2127 = vmatpush1.bf16.msra.mxu1 %v3724_v7  ;;  %v3796_v7 = vld [vmem:[#allocation2 + $0x430] ss:$24 sps:$4 sm:$0xff]  }
 0x118   :  { %2128 = vmatprep.subr.bf16.mxu1 %v3732_v29  ;;  %v3884_v29 = vld [vmem:[#allocation7 + $0x48] sm:$0xff]  }
 0x119   :  { %2006 = vmatpush1.bf16.msra.mxu0 %v3718_v26  ;;  %v2418_v26 = vld [vmem:[%s4282_s1] sm:$0x1]  ;;  %s4094_s1 = smov [#allocation11]  }
 0x11a   :  { %2139 = vmatprep.subr.bf16.mxu0 %v3729_v28  ;;  %v3801_v28 = vld [vmem:[#allocation2 + $0x464] ss:$24 sps:$4 sm:$0xff]   ;;  %s2946_s19 = sshll.u32 %s4094_s1, 4  ;;  %s2947_s19 = int_to_ptr.vmem [resolvable:$true] %s2946_s19 }
 0x11b   :  { %2129 = vmatpush1.bf16.msra.mxu1 %v3730_v32  ;;  %v3799_v32 = vld [vmem:[#allocation2 + $0x460] ss:$24 sps:$4 sm:$0xff]   ;;  %s4052_s20 = scalar_lea.vmem %s2947_s19, 32  ;;  %p4057_p13 = scmp.lt.s32.totalorder %s2947_s19, %s2947_s19 }
 0x11c   :  { %2008 = vmatmul.mubr.bf16.vlgmr.msra.gmra.mrb[0].mxu0 %v4242_v31  ;;  %3378 = vmatprep.subr.bf16.mxu1 %v4092_v60  ;;  %p4053_p12 = scmp.ne.s32.totalorder %s2947_s19, %s4052_s20  ;;  %p4058_p0 = scmp.lt.s32.totalorder %s4052_s20, %s4052_s20 }
 0x11d   :  { %2140 = vmatpush1.bf16.msra.mxu0 %v3727_v30  ;;  %2171 = vmatprep.mubr.bf16.mxu0 %v4207_v57  ;;  %v3748_v57 = vld [vmem:[#allocation2 + $0x130] ss:$24 sps:$4 sm:$0xff]  }
 0x11e   :  { %2141 = vmatprep.subr.bf16.mxu0 %v3735_v33  ;;  %2131 = vmatmul.mubr.bf16.vlgmr.msra.gmra.mrb[0].mxu1 %v4242_v31  ;;  %v3885_v30 = vld [vmem:[#allocation7 + $0x8] sm:$0xff]   ;;  %p4059_p1 = por %p4058_p0, %p4057_p13 }
 0x11f   :  { %3379 = vmatpush3.bf16.msra.mxu1 %v3868_v61  ;;  %3394 = vmatprep.mubr.msk.bf16.mxu1 %vm4093_vm0, %v4092_v60  ;;  %v3804_v33 = vld [vmem:[#allocation2 + $0x494] ss:$24 sps:$4 sm:$0xff]   ;;  %v3823_v61 = vld [vmem:[#allocation2 + $0x5e0] ss:$24 sps:$4 sm:$0xff]  }
 0x120   :  { %3380 = vmatprep.subr.bf16.mxu1 %v4092_v60  ;;  %p4060_p2 = pnand %p4059_p1, %p4053_p12 }
 0x121   :  { %2142 = vmatpush1.bf16.msra.mxu0 %v3733_v34  ;;  %v3886_v34 = vld [vmem:[#allocation7 + $0x50] sm:$0xff]  }
 0x122   :  { %2143 = vmatprep.subr.bf16.mxu0 %v3738_v35  ;;  %v3887_v35 = vld [vmem:[#allocation7 + $0x10] sm:$0xff]  }
 0x123   :  { %3381 = vmatpush3.bf16.msra.mxu1 %v3872_v0  ;;  %v3831_v0 = vld [vmem:[#allocation2 + $0x644] ss:$24 sps:$4 sm:$0xff]  }
 0x124   :  { %3382 = vmatprep.subr.bf16.mxu1 %v4092_v60 }
 0x125   :  { %2144 = vmatpush1.bf16.msra.mxu0 %v3736_v21  ;;  %v3802_v21 = vld [vmem:[#allocation2 + $0x490] ss:$24 sps:$4 sm:$0xff]  }
 0x126   :  { %2145 = vmatprep.subr.bf16.mxu0 %v3741_v36  ;;  %v3807_v36 = vld [vmem:[#allocation2 + $0x4c4] ss:$24 sps:$4 sm:$0xff]  }
 0x127   :  { %3383 = vmatpush3.bf16.msra.mxu1 %v3876_v3  ;;  %v3832_v3 = vld [vmem:[#allocation2 + $0x670] ss:$24 sps:$4 sm:$0xff]  }
 0x128   :  { %3384 = vmatprep.subr.bf16.mxu1 %v4092_v60 }
 0x129   :  { %2146 = vmatpush1.bf16.msra.mxu0 %v3739_v37  ;;  %v3888_v37 = vld [vmem:[#allocation7 + $0x58] sm:$0xff]  }
 0x12a   :  { %2147 = vmatprep.subr.bf16.mxu0 %v3744_v38  ;;  %v3889_v38 = vld [vmem:[#allocation7 + $0x18] sm:$0xff]  }
 0x12b   :  { %3385 = vmatpush3.bf16.msra.mxu1 %v3877_v6  ;;  %v3840_v6 = vld [vmem:[#allocation2 + $0x6d4] ss:$24 sps:$4 sm:$0xff]  }
 0x12c   :  { %3386 = vmatprep.subr.bf16.mxu1 %v4092_v60 }
 0x12d   :  { %2148 = vmatpush1.bf16.msra.mxu0 %v3742_v39  ;;  %v3805_v39 = vld [vmem:[#allocation2 + $0x4c0] ss:$24 sps:$4 sm:$0xff]  }
 0x12e   :  { %2149 = vmatprep.subr.bf16.mxu0 %v3747_v41  ;;  %v3810_v41 = vld [vmem:[#allocation2 + $0x4f4] ss:$24 sps:$4 sm:$0xff]  }
 0x12f   :  { %3387 = vmatpush3.bf16.msra.mxu1 %v3878_v10  ;;  %v3846_v10 = vld [vmem:[#allocation2 + $0x734] ss:$24 sps:$4 sm:$0xff]  }
 0x130   :  { %3388 = vmatprep.subr.bf16.mxu1 %v4092_v60 }
 0x131   :  { %2150 = vmatpush1.bf16.msra.mxu0 %v3745_v42  ;;  %v3890_v42 = vld [vmem:[#allocation7 + $0x60] sm:$0xff]  }
 0x132   :  { %2151 = vmatprep.subr.bf16.mxu0 %v3750_v43  ;;  %v3891_v43 = vld [vmem:[#allocation7 + $0x20] sm:$0xff]  }
 0x133   :  { %3389 = vmatpush3.bf16.msra.mxu1 %v3879_v13  ;;  %v3852_v13 = vld [vmem:[#allocation2 + $0x794] ss:$24 sps:$4 sm:$0xff]  }
 0x134   :  { %3390 = vmatprep.subr.bf16.mxu1 %v4092_v60 }
 0x135   :  { %2152 = vmatpush1.bf16.msra.mxu0 %v3748_v57  ;;  %v3808_v57 = vld [vmem:[#allocation2 + $0x4f0] ss:$24 sps:$4 sm:$0xff]  }
 0x136   :  { %2153 = vmatprep.subr.bf16.mxu0 %v3753_v44  ;;  %v3892_v44 = vld [vmem:[#allocation7 + $0x68] sm:$0xff]  }
 0x137   :  { %3391 = vmatpush3.bf16.msra.mxu1 %v3880_v16  ;;  %v3853_v16 = vld [vmem:[#allocation2 + $0x7c0] ss:$24 sps:$4 sm:$0xff]  }
 0x138   :  { %3392 = vmatprep.subr.bf16.mxu1 %v4092_v60  ;;  %v3825_v60 = vld [vmem:[#allocation2 + $0x5e4] ss:$24 sps:$4 sm:$0xff]  }
 0x139   :  { %2154 = vmatpush1.bf16.msra.mxu0 %v3751_v45  ;;  %v3813_v45 = vld [vmem:[#allocation2 + $0x524] ss:$24 sps:$4 sm:$0xff]  }
 0x13a   :  { %2155 = vmatprep.subr.bf16.mxu0 %v3756_v46  ;;  %v3893_v46 = vld [vmem:[#allocation7 + $0x28] sm:$0xff]  }
 0x13b   :  { %3393 = vmatpush3.bf16.msra.mxu1 %v3881_v19  ;;  %v3861_v19 = vld [vmem:[#allocation2 + $0x824] ss:$24 sps:$4 sm:$0xff]  }
 0x13c   :  { %3312 = vmatprep.subr.bf16.mxu1 %v3882_v24  ;;  %v3862_v24 = vld [vmem:[#allocation2 + $0x850] ss:$24 sps:$4 sm:$0xff]  }
 0x13d   :  { %2156 = vmatpush1.bf16.msra.mxu0 %v3754_v47  ;;  %v3894_v47 = vld [vmem:[#allocation7 + $0x70] sm:$0xff]  }
 0x13e   :  { %2157 = vmatprep.subr.bf16.mxu0 %v3759_v48  ;;  %3395 = vmatmul.mubr.bf16.vlgmr.msra.gmra.mrb[4].mxu1 %v2418_v26  ;;  %v3811_v48 = vld [vmem:[#allocation2 + $0x520] ss:$24 sps:$4 sm:$0xff]  }
 0x13f   :  { %3313 = vmatpush3.bf16.msra.mxu1 %v3883_v25  ;;  %v3867_v25 = vld [vmem:[#allocation2 + $0x884] ss:$24 sps:$4 sm:$0xff]   ;;  %v3865_v26 = vld [vmem:[#allocation2 + $0x880] ss:$24 sps:$4 sm:$0xff]  }
 0x140   :  { %3314 = vmatprep.subr.bf16.mxu1 %v3884_v29  ;;  %v3875_v29 = vld [vmem:[#allocation2 + $0x8e4] ss:$24 sps:$4 sm:$0xff]  }
 0x141   :  { %2158 = vmatpush1.bf16.msra.mxu0 %v3757_v49  ;;  %v3816_v49 = vld [vmem:[#allocation2 + $0x554] ss:$24 sps:$4 sm:$0xff]  }
 0x142   :  { %2159 = vmatprep.subr.bf16.mxu0 %v3762_v50  ;;  %v3895_v50 = vld [vmem:[#allocation7 + $0x30] sm:$0xff]  }
 0x143   :  { %3315 = vmatpush3.bf16.msra.mxu1 %v3885_v30  ;;  %v3873_v30 = vld [vmem:[#allocation2 + $0x8e0] ss:$24 sps:$4 sm:$0xff]  }
 0x144   :  { %3316 = vmatprep.subr.bf16.mxu1 %v3886_v34  ;;  %v429_v34 = vsub.s32 1, %v4201_v40 }
 0x145   :  { %2160 = vmatpush1.bf16.msra.mxu0 %v3760_v51  ;;  %v3896_v51 = vld [vmem:[#allocation7 + $0x78] sm:$0xff]  }
 0x146   :  { %2161 = vmatprep.subr.bf16.mxu0 %v3765_v52  ;;  %v3814_v52 = vld [vmem:[#allocation2 + $0x550] ss:$24 sps:$4 sm:$0xff]  }
 0x147   :  { %3317 = vmatpush3.bf16.msra.mxu1 %v3887_v35 }
 0x148   :  { %3318 = vmatprep.subr.bf16.mxu1 %v3888_v37 }
 0x149   :  { %2162 = vmatpush1.bf16.msra.mxu0 %v3763_v53  ;;  %v3819_v53 = vld [vmem:[#allocation2 + $0x584] ss:$24 sps:$4 sm:$0xff]  }
 0x14a   :  { %2163 = vmatprep.subr.bf16.mxu0 %v3768_v54  ;;  %v3897_v54 = vld [vmem:[#allocation7 + $0x38] sm:$0xff]  }
 0x14b   :  { %3319 = vmatpush3.bf16.msra.mxu1 %v3889_v38 }
 0x14c   :  { %3320 = vmatprep.subr.bf16.mxu1 %v3890_v42 }
 0x14d   :  { %2164 = vmatpush1.bf16.msra.mxu0 %v3766_v55  ;;  %v3817_v55 = vld [vmem:[#allocation2 + $0x580] ss:$24 sps:$4 sm:$0xff]  }
 0x14e   :  { %2165 = vmatprep.subr.bf16.mxu0 %v3771_v56  ;;  %v3822_v56 = vld [vmem:[#allocation2 + $0x5b4] ss:$24 sps:$4 sm:$0xff]  }
 0x14f   :  { %3321 = vmatpush3.bf16.msra.mxu1 %v3891_v43 }
 0x150   :  { %3322 = vmatprep.subr.bf16.mxu1 %v3892_v44 }
 0x151   :  { %2166 = vmatpush1.bf16.msra.mxu0 %v3769_v58  ;;  %v3898_v58 = vld [vmem:[#allocation7 + $0xc0] sm:$0xff]  }
 0x152   :  { %2167 = vmatprep.subr.bf16.mxu0 %v3774_v59  ;;  %v3820_v59 = vld [vmem:[#allocation2 + $0x5b0] ss:$24 sps:$4 sm:$0xff]  }
 0x153   :  { %3323 = vmatpush3.bf16.msra.mxu1 %v3893_v46 }
 0x154   :  { %3324 = vmatprep.subr.bf16.mxu1 %v3894_v47 }
 0x155   :  { %2168 = vmatpush1.bf16.msra.mxu0 %v3772_v62  ;;  %v3828_v62 = vld [vmem:[#allocation2 + $0x614] ss:$24 sps:$4 sm:$0xff]  }
 0x156   :  { %2169 = vmatprep.subr.bf16.mxu0 %v3777_v63  ;;  %v3826_v63 = vld [vmem:[#allocation2 + $0x610] ss:$24 sps:$4 sm:$0xff]  }
 0x157   :  { %3325 = vmatpush3.bf16.msra.mxu1 %v3895_v50 }
 0x158   :  { %3326 = vmatprep.subr.bf16.mxu1 %v3896_v51 }
 0x159   :  { %2170 = vmatpush1.bf16.msra.mxu0 %v3775_v1  ;;  %v3829_v1 = vld [vmem:[#allocation2 + $0x640] ss:$24 sps:$4 sm:$0xff]  }
 0x15a   :  { %2180 = vmatprep.subr.bf16.mxu0 %v3780_v2  ;;  %v3834_v2 = vld [vmem:[#allocation2 + $0x674] ss:$24 sps:$4 sm:$0xff]  }
 0x15b   :  { %3327 = vmatpush3.bf16.msra.mxu1 %v3897_v54 }
 0x15c   :  { %2172 = vmatmul.mubr.bf16.vlgmr.msra.gmra.mrb[4].mxu0 %v4215_v14  ;;  %v3792_v14 = vld [vmem:[#allocation2 + $0x3d4] ss:$24 sps:$4 sm:$0xff]   ;;  %3334 = vmatprep.subr.bf16.mxu1 %v3898_v58 }
 0x15d   :  { %2181 = vmatpush1.bf16.msra.mxu0 %v3778_v4  ;;  %2212 = vmatprep.mubr.bf16.mxu0 %v4217_v18  ;;  %v3790_v18 = vld [vmem:[#allocation2 + $0x3d0] ss:$24 sps:$4 sm:$0xff]   ;;  %v3837_v4 = vld [vmem:[#allocation2 + $0x6a4] ss:$24 sps:$4 sm:$0xff]  }
 0x15e   :  { %2182 = vmatprep.subr.bf16.mxu0 %v3783_v5  ;;  %v3835_v5 = vld [vmem:[#allocation2 + $0x6a0] ss:$24 sps:$4 sm:$0xff]  }
 0x161   :  { %2183 = vmatpush1.bf16.msra.mxu0 %v3781_v8  ;;  %v3838_v8 = vld [vmem:[#allocation2 + $0x6d0] ss:$24 sps:$4 sm:$0xff]  }
 0x162   :  { %2184 = vmatprep.subr.bf16.mxu0 %v3786_v9  ;;  %v3843_v9 = vld [vmem:[#allocation2 + $0x704] ss:$24 sps:$4 sm:$0xff]  }
 0x165   :  { %2185 = vmatpush1.bf16.msra.mxu0 %v3784_v11  ;;  %v3849_v11 = vld [vmem:[#allocation2 + $0x764] ss:$24 sps:$4 sm:$0xff]  }
 0x166   :  { %2186 = vmatprep.subr.bf16.mxu0 %v3789_v12  ;;  %v3847_v12 = vld [vmem:[#allocation2 + $0x760] ss:$24 sps:$4 sm:$0xff]  }
 0x169   :  { %2187 = vmatpush1.bf16.msra.mxu0 %v3787_v15  ;;  %v3850_v15 = vld [vmem:[#allocation2 + $0x790] ss:$24 sps:$4 sm:$0xff]  }
 0x16a   :  { %2188 = vmatprep.subr.bf16.mxu0 %v3792_v14  ;;  %v3855_v14 = vld [vmem:[#allocation2 + $0x7c4] ss:$24 sps:$4 sm:$0xff]  }
 0x16d   :  { %2189 = vmatpush1.bf16.msra.mxu0 %v3790_v18  ;;  %v3858_v18 = vld [vmem:[#allocation2 + $0x7f4] ss:$24 sps:$4 sm:$0xff]  }
 0x16e   :  { %2190 = vmatprep.subr.bf16.mxu0 %v3795_v17  ;;  %v3856_v17 = vld [vmem:[#allocation2 + $0x7f0] ss:$24 sps:$4 sm:$0xff]  }
 0x171   :  { %2191 = vmatpush1.bf16.msra.mxu0 %v3793_v22  ;;  %v3859_v22 = vld [vmem:[#allocation2 + $0x820] ss:$24 sps:$4 sm:$0xff]  }
 0x172   :  { %2192 = vmatprep.subr.bf16.mxu0 %v3798_v23  ;;  %v3864_v23 = vld [vmem:[#allocation2 + $0x854] ss:$24 sps:$4 sm:$0xff]  }
 0x175   :  { %2193 = vmatpush1.bf16.msra.mxu0 %v3796_v7  ;;  %v3871_v7 = vld [vmem:[#allocation2 + $0x8b4] ss:$24 sps:$4 sm:$0xff]  }
 0x176   :  { %2194 = vmatprep.subr.bf16.mxu0 %v3801_v28  ;;  %v3869_v28 = vld [vmem:[#allocation2 + $0x8b0] ss:$24 sps:$4 sm:$0xff]  }
 0x179   :  { %2195 = vmatpush1.bf16.msra.mxu0 %v3799_v32  ;;  %v425_v32 = vsub.s32 0, %v4201_v40 }
 0x17a   :  { %2196 = vmatprep.subr.bf16.mxu0 %v3804_v33  ;;  %v4256_v33 = vld [vmem:[#allocation5] sm:$0x3f] }
 0x17b   :  { %v426_v35 = vrot.slane %v4256_v33, %v425_v32  ;;  %v3906_v32 = vld [vmem:[#allocation7 + $0xe0] sm:$0xff]  }
 0x17d   :  { %2197 = vmatpush1.bf16.msra.mxu0 %v3802_v21  ;;  %v430_v21 = vrot.slane %v4256_v33, %v429_v34  ;;  %v3907_v34 = vld [vmem:[#allocation7 + $0xa0] sm:$0xff]  }
 0x17e   :  { %2198 = vmatprep.subr.bf16.mxu0 %v3807_v36  ;;  %v437_v36 = vsub.s32 3, %v4201_v40 }
 0x180   :  { %v438_v43 = vrot.slane %v4256_v33, %v437_v36  ;;  %v3909_v36 = vld [vmem:[#allocation7 + $0xa8] sm:$0xff]  }
 0x181   :  { %2199 = vmatpush1.bf16.msra.mxu0 %v3805_v39 }
 0x182   :  { %2200 = vmatprep.subr.bf16.mxu0 %v3810_v41 }
 0x185   :  { %2201 = vmatpush1.bf16.msra.mxu0 %v3808_v57 }
 0x186   :  { %2202 = vmatprep.subr.bf16.mxu0 %v3813_v45 }
 0x189   :  { %2203 = vmatpush1.bf16.msra.mxu0 %v3811_v48 }
 0x18a   :  { %2204 = vmatprep.subr.bf16.mxu0 %v3816_v49 }
 0x18d   :  { %2205 = vmatpush1.bf16.msra.mxu0 %v3814_v52  ;;  %v433_v52 = vsub.s32 2, %v4201_v40 }
 0x18e   :  { %2206 = vmatprep.subr.bf16.mxu0 %v3819_v53 }
 0x191   :  { %2207 = vmatpush1.bf16.msra.mxu0 %v3817_v55 }
 0x192   :  { %2208 = vmatprep.subr.bf16.mxu0 %v3822_v56 }
 0x195   :  { %2209 = vmatpush1.bf16.msra.mxu0 %v3820_v59 }
 0x196   :  { %2210 = vmatprep.subr.bf16.mxu0 %v3825_v60 }
 0x199   :  { %2211 = vmatpush1.bf16.msra.mxu0 %v3823_v61  ;;  %v434_v61 = vrot.slane %v4256_v33, %v433_v52  ;;  %v3922_v52 = vld [vmem:[#allocation7 + $0x160] sm:$0xff]  }
 0x19a   :  { %2221 = vmatprep.subr.bf16.mxu0 %v3828_v62 }
 0x19c   :  { %2213 = vmatmul.mubr.bf16.vlgmr.msra.gmra.mrb[4].mxu0 %v4225_v20  ;;  %v3841_v20 = vld [vmem:[#allocation2 + $0x700] ss:$24 sps:$4 sm:$0xff]  }
 0x19d   :  { %2222 = vmatpush1.bf16.msra.mxu0 %v3826_v63  ;;  %2253 = vmatprep.mubr.bf16.mxu0 %v4234_v27  ;;  %v3844_v27 = vld [vmem:[#allocation2 + $0x730] ss:$24 sps:$4 sm:$0xff]  }
 0x19e   :  { %2223 = vmatprep.subr.bf16.mxu0 %v3831_v0 }
 0x1a1   :  { %2224 = vmatpush1.bf16.msra.mxu0 %v3829_v1 }
 0x1a2   :  { %2225 = vmatprep.subr.bf16.mxu0 %v3834_v2 }
 0x1a5   :  { %2226 = vmatpush1.bf16.msra.mxu0 %v3832_v3 }
 0x1a6   :  { %2227 = vmatprep.subr.bf16.mxu0 %v3837_v4 }
 0x1a9   :  { %2228 = vmatpush1.bf16.msra.mxu0 %v3835_v5 }
 0x1aa   :  { %2229 = vmatprep.subr.bf16.mxu0 %v3840_v6 }
 0x1ad   :  { %2230 = vmatpush1.bf16.msra.mxu0 %v3838_v8 }
 0x1ae   :  { %2231 = vmatprep.subr.bf16.mxu0 %v3843_v9 }
 0x1b1   :  { %2232 = vmatpush1.bf16.msra.mxu0 %v3841_v20 }
 0x1b2   :  { %2233 = vmatprep.subr.bf16.mxu0 %v3846_v10 }
 0x1b5   :  { %2234 = vmatpush1.bf16.msra.mxu0 %v3844_v27 }
 0x1b6   :  { %2235 = vmatprep.subr.bf16.mxu0 %v3849_v11 }
 0x1b9   :  { %2236 = vmatpush1.bf16.msra.mxu0 %v3847_v12 }
 0x1ba   :  { %2237 = vmatprep.subr.bf16.mxu0 %v3852_v13 }
 0x1bd   :  { %2238 = vmatpush1.bf16.msra.mxu0 %v3850_v15 }
 0x1be   :  { %2239 = vmatprep.subr.bf16.mxu0 %v3855_v14 }
 0x1c1   :  { %2240 = vmatpush1.bf16.msra.mxu0 %v3853_v16 }
 0x1c2   :  { %2241 = vmatprep.subr.bf16.mxu0 %v3858_v18  ;;  %v3899_v18 = vld [vmem:[#allocation7 + $0x80] sm:$0xff]  }
 0x1c5   :  { %2242 = vmatpush1.bf16.msra.mxu0 %v3856_v17 }
 0x1c6   :  { %2243 = vmatprep.subr.bf16.mxu0 %v3861_v19 }
 0x1c9   :  { %2244 = vmatpush1.bf16.msra.mxu0 %v3859_v22  ;;  %v3900_v22 = vld [vmem:[#allocation7 + $0xc8] sm:$0xff]  }
 0x1ca   :  { %2245 = vmatprep.subr.bf16.mxu0 %v3864_v23 }
 0x1cd   :  { %2246 = vmatpush1.bf16.msra.mxu0 %v3862_v24 }
 0x1ce   :  { %2247 = vmatprep.subr.bf16.mxu0 %v3867_v25  ;;  %v3901_v25 = vld [vmem:[#allocation7 + $0x88] sm:$0xff]  }
 0x1d1   :  { %2248 = vmatpush1.bf16.msra.mxu0 %v3865_v26 }
 0x1d2   :  { %2249 = vmatprep.subr.bf16.mxu0 %v3871_v7  ;;  %v3902_v7 = vld [vmem:[#allocation7 + $0xd0] sm:$0xff]  }
 0x1d5   :  { %2250 = vmatpush1.bf16.msra.mxu0 %v3869_v28  ;;  %v3903_v28 = vld [vmem:[#allocation7 + $0x90] sm:$0xff]  }
 0x1d6   :  { %2251 = vmatprep.subr.bf16.mxu0 %v3875_v29  ;;  %v3904_v29 = vld [vmem:[#allocation7 + $0xd8] sm:$0xff]  }
 0x1d9   :  { %2252 = vmatpush1.bf16.msra.mxu0 %v3873_v30  ;;  %v3905_v30 = vld [vmem:[#allocation7 + $0x98] sm:$0xff]  }
 0x1dc   :  { %2254 = vmatmul.mubr.bf16.vlgmr.msra.gmra.mrb[4].mxu0 %v4242_v31 }
 0x1ef   :  { %v2009_v37 = vpop.f32.mrb[0].mxu0 }
 0x1f0   :  { %v3398_v38 = vadd.f32 %v2009_v37, %v426_v35  ;;  %v2011_v39 = vpop.f32.mrb[1].mxu0  ;;  %v3908_v35 = vld [vmem:[#allocation7 + $0xe8] sm:$0xff]   ;;  %v3910_v37 = vld [vmem:[#allocation7 + $0xf0] sm:$0xff]  }
 0x1f1   :  { %v3399_v41 = vadd.f32 %v2011_v39, %v430_v21  ;;  %v2013_v42 = vpop.f32.mrb[2].mxu0  ;;  %v2132_v45 = vpop.f32.mrb[0].mxu1  ;;  %v3911_v39 = vld [vmem:[#allocation7 + $0xb0] sm:$0xff]  }
 0x1f2   :  { %v2262_v31 = vmul.f32 %v3398_v38, %v3398_v38  ;;  %v2014_v57 = vpop.f32.mrb[3].mxu0  ;;  %v2134_v47 = vpop.f32.mrb[1].mxu1  ;;  %v3400_v1 = vadd.f32 %v2132_v45, %v434_v61  ;;  %v3915_v45 = vld [vmem:[#allocation7 + $0x100] sm:$0xff]  }
 0x1f3   :  { %v2263_v44 = vmul.f32 %v3399_v41, %v3399_v41  ;;  %v3401_v49 = vadd.f32 %v2134_v47, %v438_v43  ;;  %v2136_v50 = vpop.f32.mrb[2].mxu1  ;;  %v3913_v43 = vld [vmem:[#allocation7 + $0xb8] sm:$0xff]   ;;  %v3917_v47 = vld [vmem:[#allocation7 + $0x108] sm:$0xff]  }
 0x1f4   :  { %v2268_v46 = vmul.f32 %v3398_v38, %v2262_v31  ;;  %v2137_v53 = vpop.f32.mrb[3].mxu1  ;;  %v2264_v3 = vmul.f32 %v3400_v1, %v3400_v1  ;;  %v3920_v50 = vld [vmem:[#allocation7 + $0x158] sm:$0xff]  }
 0x1f5   :  { %v2269_v48 = vmul.f32 %v3399_v41, %v2263_v44  ;;  %v2265_v55 = vmul.f32 %v3401_v49, %v3401_v49  ;;  %v3914_v44 = vld [vmem:[#allocation7 + $0x140] sm:$0xff]  }
 0x1f6   :  { %v2274_v51 = vmul.f32 0.044715, %v2268_v46  ;;  %v2270_v5 = vmul.f32 %v3400_v1, %v2264_v3  ;;  %v3916_v46 = vld [vmem:[#allocation7 + $0x148] sm:$0xff]   ;;  %v3923_v53 = vld [vmem:[#allocation7 + $0x120] sm:$0xff]  }
 0x1f7   :  { %v2275_v54 = vmul.f32 0.044715, %v2269_v48  ;;  %v2271_v59 = vmul.f32 %v3401_v49, %v2265_v55  ;;  %v3918_v48 = vld [vmem:[#allocation7 + $0x150] sm:$0xff]   ;;  %v3925_v55 = vld [vmem:[#allocation7 + $0x128] sm:$0xff]  }
 0x1f8   :  { %v2280_v56 = vadd.f32 %v3398_v38, %v2274_v51  ;;  %v2276_v10 = vmul.f32 0.044715, %v2270_v5  ;;  %v3921_v51 = vld [vmem:[#allocation7 + $0x118] sm:$0xff]  }
 0x1f9   :  { %v2281_v58 = vadd.f32 %v3399_v41, %v2275_v54  ;;  %v2277_v63 = vmul.f32 0.044715, %v2271_v59  ;;  %v3924_v54 = vld [vmem:[#allocation7 + $0x168] sm:$0xff]   ;;  %v3928_v59 = vld [vmem:[#allocation7 + $0x178] sm:$0xff]  }
 0x1fa   :  { %v2286_v60 = vmul.f32 0.7978846, %v2280_v56  ;;  %v2282_v14 = vadd.f32 %v3400_v1, %v2276_v10  ;;  %v3926_v56 = vld [vmem:[#allocation7 + $0x170] sm:$0xff]  }
 0x1fb   :  { %v2287_v62 = vmul.f32 0.7978846, %v2281_v58  ;;  %v2283_v0 = vadd.f32 %v3401_v49, %v2277_v63  ;;  %v3927_v58 = vld [vmem:[#allocation7 + $0x130] sm:$0xff]  }
 0x1fc   :  { %3930 = vtanh.f32 %v2286_v60  ;;  %v2288_v24 = vmul.f32 0.7978846, %v2282_v14  ;;  %v3929_v60 = vld [vmem:[#allocation7 + $0x138] sm:$0xff]  }
 0x1fd   :  { %3932 = vtanh.f32 %v2287_v62  ;;  %v2289_v2 = vmul.f32 0.7978846, %v2283_v0 }
 0x1ff   :  { %3934 = vtanh.f32 %v2289_v2  ;;  %v445_v2 = vsub.s32 5, %v4201_v40 }
 0x200   :  { %3936 = vtanh.f32 %v2288_v24 }
 0x206   :  { %v3931_v4 = vpop.eup %3930 }
 0x207   :  { %v3933_v6 = vpop.eup %3932  ;;  %v2298_v8 = vadd.f32 1.0, %v3931_v4  ;;  %v446_v4 = vrot.slane %v4256_v33, %v445_v2 }
 0x208   :  { %v2299_v9 = vadd.f32 1.0, %v3933_v6 }
 0x209   :  { %v2304_v20 = vmul.f32 0.5, %v2298_v8  ;;  %v3935_v11 = vpop.eup %3934 }
 0x20a   :  { %v2305_v27 = vmul.f32 0.5, %v2299_v9  ;;  %v2301_v15 = vadd.f32 1.0, %v3935_v11  ;;  %v3937_v21 = vpop.eup %3936 }
 0x20b   :  { %v2310_v12 = vmul.f32 %v3398_v38, %v2304_v20  ;;  %v2300_v38 = vadd.f32 1.0, %v3937_v21 }
 0x20c   :  { %v2311_v13 = vmul.f32 %v3399_v41, %v2305_v27  ;;  %v2307_v17 = vmul.f32 0.5, %v2301_v15  ;;  %v3912_v41 = vld [vmem:[#allocation7 + $0xf8] sm:$0xff]  }
 0x20d   :  { %v2316_v19 = vpack.c.bf16 %v2310_v12, %v2310_v12  ;;  %v2306_v42 = vmul.f32 0.5, %v2300_v38 }
 0x20e   :  { %v2317_v16 = vpack.c.bf16 %v2311_v13, %v2311_v13  ;;  %v2313_v23 = vmul.f32 %v3401_v49, %v2307_v17  ;;  %v3919_v49 = vld [vmem:[#allocation7 + $0x110] sm:$0xff]  }
 0x20f   :  { %v2312_v31 = vmul.f32 %v3400_v1, %v2306_v42  ;;  %v441_v1 = vsub.s32 4, %v4201_v40 }
 0x210   :  { %2843 = vmatprep.mubr.bf16.mxu1 %v2317_v16  ;;  %v2319_v26 = vpack.c.bf16 %v2313_v23, %v2313_v23 }
 0x211   :  { %2844 = vmatmul.mubr.bf16.vlgmr.msra.gmra.mrb[8].mxu1 %v2316_v19  ;;  %v2318_v57 = vpack.c.bf16 %v2312_v31, %v2312_v31  ;;  %v2517_v61 = vpop.f32.mrb[4].mxu1  ;;  %v442_v3 = vrot.slane %v4256_v33, %v441_v1 }
 0x212   :  { %3335 = vmatpush3.bf16.msra.mxu1 %v3899_v18  ;;  %2883 = vmatprep.mubr.bf16.mxu1 %v2319_v26  ;;  %v3396_v62 = vpop.f32.mrb[5].mxu1 }
 0x213   :  { %3336 = vmatprep.subr.bf16.mxu1 %v3900_v22  ;;  %v2520_v63 = vpop.f32.mrb[6].mxu1 }
 0x214   :  { %v3397_v0 = vpop.f32.mrb[7].mxu1 }
 0x216   :  { %3337 = vmatpush3.bf16.msra.mxu1 %v3901_v25 }
 0x217   :  { %3338 = vmatprep.subr.bf16.mxu1 %v3902_v7 }
 0x21a   :  { %3339 = vmatpush3.bf16.msra.mxu1 %v3903_v28 }
 0x21b   :  { %3340 = vmatprep.subr.bf16.mxu1 %v3904_v29 }
 0x21e   :  { %3341 = vmatpush3.bf16.msra.mxu1 %v3905_v30 }
 0x21f   :  { %3342 = vmatprep.subr.bf16.mxu1 %v3906_v32 }
 0x222   :  { %3343 = vmatpush3.bf16.msra.mxu1 %v3907_v34 }
 0x223   :  { %3344 = vmatprep.subr.bf16.mxu1 %v3908_v35 }
 0x226   :  { %3345 = vmatpush3.bf16.msra.mxu1 %v3909_v36 }
 0x227   :  { %3346 = vmatprep.subr.bf16.mxu1 %v3910_v37 }
 0x22a   :  { %3347 = vmatpush3.bf16.msra.mxu1 %v3911_v39 }
 0x22b   :  { %3348 = vmatprep.subr.bf16.mxu1 %v3912_v41 }
 0x22e   :  { %3349 = vmatpush3.bf16.msra.mxu1 %v3913_v43 }
 0x22f   :  { %3356 = vmatprep.subr.bf16.mxu1 %v3914_v44 }
 0x231   :  { %2884 = vmatmul.mubr.bf16.vlgmr.msra.gmra.mrb[12].mxu1 %v2318_v57 }
 0x232   :  { %3357 = vmatpush3.bf16.msra.mxu1 %v3915_v45 }
 0x233   :  { %3358 = vmatprep.subr.bf16.mxu1 %v3916_v46 }
 0x236   :  { %3359 = vmatpush3.bf16.msra.mxu1 %v3917_v47  ;;  %v3302_v47 = vld [vmem:[#allocation10] ss:$0 sm:$0xff] }
 0x237   :  { %3360 = vmatprep.subr.bf16.mxu1 %v3918_v48 }
 0x23a   :  { %3361 = vmatpush3.bf16.msra.mxu1 %v3919_v49 }
 0x23b   :  { %3362 = vmatprep.subr.bf16.mxu1 %v3920_v50 }
 0x23e   :  { %3363 = vmatpush3.bf16.msra.mxu1 %v3921_v51 }
 0x23f   :  { %3364 = vmatprep.subr.bf16.mxu1 %v3922_v52 }
 0x242   :  { %3365 = vmatpush3.bf16.msra.mxu1 %v3923_v53 }
 0x243   :  { %3366 = vmatprep.subr.bf16.mxu1 %v3924_v54 }
 0x246   :  { %3367 = vmatpush3.bf16.msra.mxu1 %v3925_v55 }
 0x247   :  { %3368 = vmatprep.subr.bf16.mxu1 %v3926_v56 }
 0x24a   :  { %3369 = vmatpush3.bf16.msra.mxu1 %v3927_v58 }
 0x24b   :  { %3370 = vmatprep.subr.bf16.mxu1 %v3928_v59 }
 0x24e   :  { %3371 = vmatpush3.bf16.msra.mxu1 %v3929_v60 }
 0x2af   :  { %v2255_v5 = vpop.f32.mrb[4].mxu0 }
 0x2b0   :  { %v3402_v6 = vadd.f32 %v2255_v5, %v442_v3  ;;  %v2257_v8 = vpop.f32.mrb[5].mxu0 }
 0x2b1   :  { %v3403_v9 = vadd.f32 %v2257_v8, %v446_v4  ;;  %v2259_v20 = vpop.f32.mrb[6].mxu0 }
 0x2b2   :  { %v2266_v10 = vmul.f32 %v3402_v6, %v3402_v6  ;;  %v2260_v27 = vpop.f32.mrb[7].mxu0 }
 0x2b3   :  { %v2267_v11 = vmul.f32 %v3403_v9, %v3403_v9 }
 0x2b4   :  { %v2272_v12 = vmul.f32 %v3402_v6, %v2266_v10 }
 0x2b5   :  { %v2273_v13 = vmul.f32 %v3403_v9, %v2267_v11 }
 0x2b6   :  { %v2278_v15 = vmul.f32 0.044715, %v2272_v12 }
 0x2b7   :  { %v2279_v14 = vmul.f32 0.044715, %v2273_v13 }
 0x2b8   :  { %v2284_v16 = vadd.f32 %v3402_v6, %v2278_v15 }
 0x2b9   :  { %v2285_v18 = vadd.f32 %v3403_v9, %v2279_v14 }
 0x2ba   :  { %v2290_v17 = vmul.f32 0.7978846, %v2284_v16 }
 0x2bb   :  { %v2291_v40 = vmul.f32 0.7978846, %v2285_v18 }
 0x2bc   :  { %3938 = vtanh.f32 %v2290_v17 }
 0x2bd   :  { %3940 = vtanh.f32 %v2291_v40 }
 0x2c6   :  { %v3939_v19 = vpop.eup %3938 }
 0x2c7   :  { %v3941_v33 = vpop.eup %3940  ;;  %v2302_v22 = vadd.f32 1.0, %v3939_v19 }
 0x2c8   :  { %v2303_v23 = vadd.f32 1.0, %v3941_v33 }
 0x2c9   :  { %v2308_v24 = vmul.f32 0.5, %v2302_v22 }
 0x2ca   :  { %v2309_v25 = vmul.f32 0.5, %v2303_v23 }
 0x2cb   :  { %v2314_v26 = vmul.f32 %v3402_v6, %v2308_v24 }
 0x2cc   :  { %v2315_v7 = vmul.f32 %v3403_v9, %v2309_v25 }
 0x2cd   :  { %v2320_v29 = vpack.c.bf16 %v2314_v26, %v2314_v26 }
 0x2ce   :  { %v2321_v28 = vpack.c.bf16 %v2315_v7, %v2315_v7 }
 0x2d0   :  { %2923 = vmatprep.mubr.bf16.mxu1 %v2321_v28 }
 0x2d1   :  { %2924 = vmatmul.mubr.bf16.vlgmr.msra.gmra.mrb[16].mxu1 %v2320_v29 }
 0x2e4   :  { %v3328_v30 = vpop.f32.mrb[8].mxu1 }
 0x2e5   :  { %v3329_v32 = vpop.f32.mrb[9].mxu1 }
 0x2e6   :  { %v3330_v34 = vadd.f32 %v3329_v32, %v3328_v30  ;;  %v3331_v35 = vpop.f32.mrb[10].mxu1 }
 0x2e7   :  { %v3332_v21 = vpop.f32.mrb[11].mxu1 }
 0x2e8   :  { %v2846_v36 = vadd.f32 %v3330_v34, %v2517_v61 }
 0x304   :  { %v3350_v37 = vpop.f32.mrb[12].mxu1 }
 0x305   :  { %v3351_v38 = vpop.f32.mrb[13].mxu1 }
 0x306   :  { %v3352_v39 = vadd.f32 %v3351_v38, %v3350_v37  ;;  %v3353_v41 = vpop.f32.mrb[14].mxu1 }
 0x307   :  { %v3354_v42 = vpop.f32.mrb[15].mxu1 }
 0x308   :  { %v2886_v43 = vadd.f32 %v3352_v39, %v2846_v36 }
 0x3a4   :  { %v3372_v31 = vpop.f32.mrb[16].mxu1 }
 0x3a5   :  { %v3373_v57 = vpop.f32.mrb[17].mxu1 }
 0x3a6   :  { %v3374_v44 = vadd.f32 %v3373_v57, %v3372_v31  ;;  %v3375_v45 = vpop.f32.mrb[18].mxu1 }
 0x3a7   :  { %v3376_v46 = vpop.f32.mrb[19].mxu1 }
 0x3a8   :  { %v2926_v48 = vadd.f32 %v3374_v44, %v2886_v43 }
 0x3aa   :  { %v2938_v49 = vadd.f32 %v3302_v47, %v2926_v48 }
 0x3ac   :  { %2939 = vst [vmem:[#allocation11] sm:$0x3] %v2938_v49 }
 0x3ad   :  { %4063 = shalt.err (!%p4060_p2)
}
 0x3ae   :  { %s4064_s23 = scalar_lea.hbm %s4288_s7, 32 }
 0x3af   :  { %p4065_p3 = scmp.ne.s32.totalorder %s4288_s7, %s4064_s23  ;;  %p4068_p4 = scmp.lt.u32.totalorder %s4064_s23, %s4288_s7 }
 0x3b1   :  { %p4070_p5 = pnand %p4068_p4, %p4065_p3 }
 0x3b3   :  { %4073 = shalt.err (!%p4070_p5)
}
 0x3b4   :  { %2949 = dma.vmem_to_hbm [thread:$0]  %s2947_s19, 32, %s4288_s7, [#allocation4]  }
 0x3b5   :  { %4080 = dma.done.wait [#allocation4], 32  }
 0x3b6   :  { %4081 = vsyncadd [#allocation4], 4294967264 }
 0x3b7   :  { %2953 = vsyncpa [#allocation3], 1 }
 0x3b8   :  { %2954 = vsyncpa [#allocation6], 1 }
 0x3b9   :  { %2955 = vsyncpa [#allocation9], 1 }
 0x3ba   :  { %2956 = vsyncpa [#allocation4], 1 }

</bundles_post_ra>
